<compile_context>
chip_gen: v7x
topology: tpu7x:2x2x1
jax: 0.10.0
libtpu: 0.0.40
codegen_flags: <defaults>
</compile_context>

<pallas_src>
import jax
import jax.numpy as jnp
from jax import lax
from jax.experimental import pallas as pl
from jax.experimental.pallas import tpu as pltpu


def _han_kernel(xcat_ref, h0_ref, doclen_ref,
                w_in_r_ref, w_in_z_ref, w_in_n_ref,
                b_r_ref, b_z_ref, b_n_ref,
                w_hh_r_ref, w_hh_z_ref, w_hh_n_ref, b_hn_ref,
                w_att_ref, w_fc_ref, b_fc_ref,
                logits_ref, hcat_ref,
                gx_r_ref, gx_z_ref, gx_n_ref, out_f_ref, out_r_ref):
    seq, batch, h2 = out_f_ref.shape
    hidden = h2 // 2

    # ---- input projections for every timestep, both directions, per gate ----
    # xcat = [x(t) | x(seq-1-t)]  (seq*batch, 2*in_dim); block-diag weights put
    # the forward gate pre-activation in lanes [0:H) and the (time-reversed)
    # backward gate pre-activation in lanes [H:2H).  One-time cost, off the
    # serial critical path.  r/z biases already contain b_ih + b_hh.
    xcat = xcat_ref[...]
    gx_r_ref[...] = (jnp.dot(xcat, w_in_r_ref[...],
                             preferred_element_type=jnp.float32)
                     + b_r_ref[...]).reshape(seq, batch, h2)
    gx_z_ref[...] = (jnp.dot(xcat, w_in_z_ref[...],
                             preferred_element_type=jnp.float32)
                     + b_z_ref[...]).reshape(seq, batch, h2)
    gx_n_ref[...] = (jnp.dot(xcat, w_in_n_ref[...],
                             preferred_element_type=jnp.float32)
                     + b_n_ref[...]).reshape(seq, batch, h2)

    # Hoist loop-invariant weights out of the recurrence.
    w_hh_r = w_hh_r_ref[...]
    w_hh_z = w_hh_z_ref[...]
    w_hh_n = w_hh_n_ref[...]
    b_hn = b_hn_ref[...]

    # ---- fused bidirectional GRU recurrence on h_cat = [h_fwd | h_bwd] ----
    def step(t, h):
        gh_r = jnp.dot(h, w_hh_r, preferred_element_type=jnp.float32)
        gh_z = jnp.dot(h, w_hh_z, preferred_element_type=jnp.float32)
        gh_n = jnp.dot(h, w_hh_n, preferred_element_type=jnp.float32)
        r = jax.nn.sigmoid(gx_r_ref[t] + gh_r)
        z = jax.nn.sigmoid(gx_z_ref[t] + gh_z)
        n = jnp.tanh(gx_n_ref[t] + r * (gh_n + b_hn))
        h_new = (1.0 - z) * n + z * h
        # store in step order and reversed order; the proper f_output is a
        # lane select of the two after the loop (no per-step lane slicing).
        out_f_ref[t] = h_new
        out_r_ref[seq - 1 - t] = h_new
        return h_new

    h_last = lax.fori_loop(0, seq, step, h0_ref[...], unroll=True)
    hcat_ref[...] = h_last                       # [h_fwd_final | h_bwd_final]

    # f_output[t] = [fwd_hidden(t) | bwd_hidden(t)]
    lane = lax.broadcasted_iota(jnp.int32, (seq, batch, h2), 2)
    f_out = jnp.where(lane < hidden, out_f_ref[...], out_r_ref[...])

    # ---- attention: collapsed (sent_weight ∘ context_weight) score ----
    score = jnp.sum(f_out * w_att_ref[...], axis=-1)          # (seq, batch)
    pos = lax.broadcasted_iota(jnp.int32, (seq, batch), 0)
    valid = pos < doclen_ref[...]                              # (seq, batch)
    score = jnp.where(valid, score, -1e30)
    m = jnp.max(score, axis=0, keepdims=True)                  # (1, batch)
    exps = jnp.where(valid, jnp.exp(score - m), 0.0)           # (seq, batch)
    denom = jnp.sum(exps, axis=0, keepdims=True)               # (1, batch)
    att = exps * pl.reciprocal(denom, approx=True)             # (seq, batch)

    # attention-weighted sum over the sequence (element_wise_mul + sum).
    weighted = jnp.sum(f_out * att[:, :, None], axis=0)        # (batch, 2H)

    # final FC (lane-padded output).
    logits_ref[...] = (jnp.dot(weighted, w_fc_ref[...],
                               preferred_element_type=jnp.float32)
                       + b_fc_ref[...])


@jax.jit
def sentence_level_attention(x, h0, doc_len, params):
    seq, batch, in_dim = x.shape
    hidden = h0.shape[-1]
    h2 = 2 * hidden
    num_classes = params["fc_w"].shape[0]
    c_pad = ((num_classes + 127) // 128) * 128

    def blkdiag(a, b):
        za = jnp.zeros((a.shape[0], b.shape[1]), jnp.float32)
        zb = jnp.zeros((b.shape[0], a.shape[1]), jnp.float32)
        return jnp.concatenate(
            [jnp.concatenate([a, za], axis=1),
             jnp.concatenate([zb, b], axis=1)], axis=0)

    def gw(w, g):  # gate rows of a PyTorch (3H, K) GRU weight (order r, z, n)
        return w[g * hidden:(g + 1) * hidden]

    def gb(b, g):
        return b[g * hidden:(g + 1) * hidden]

    wih_f, whh_f = params["gru_wih_f"], params["gru_whh_f"]
    wih_b, whh_b = params["gru_wih_b"], params["gru_whh_b"]
    bih_f, bhh_f = params["gru_bih_f"], params["gru_bhh_f"]
    bih_b, bhh_b = params["gru_bih_b"], params["gru_bhh_b"]

    # Per-gate block-diagonal weights: fwd direction -> lanes [0:H),
    # bwd direction -> lanes [H:2H).
    w_in = [blkdiag(gw(wih_f, g).T, gw(wih_b, g).T) for g in range(3)]  # (2*in,2H)
    w_hh = [blkdiag(gw(whh_f, g).T, gw(whh_b, g).T) for g in range(3)]  # (2H, 2H)

    # Fold b_hh into the input bias for r and z; b_hn stays separate.
    b_r = jnp.concatenate([gb(bih_f, 0) + gb(bhh_f, 0),
                           gb(bih_b, 0) + gb(bhh_b, 0)]).reshape(1, h2)
    b_z = jnp.concatenate([gb(bih_f, 1) + gb(bhh_f, 1),
                           gb(bih_b, 1) + gb(bhh_b, 1)]).reshape(1, h2)
    b_n = jnp.concatenate([gb(bih_f, 2), gb(bih_b, 2)]).reshape(1, h2)
    b_hn = jnp.concatenate([gb(bhh_f, 2), gb(bhh_b, 2)]).reshape(1, h2)

    # [x | time-reversed x] flattened to (seq*batch, 2*in_dim).
    xcat = jnp.concatenate([x, x[::-1]], axis=-1).reshape(seq * batch, 2 * in_dim)
    h0cat = jnp.concatenate([h0[0], h0[1]], axis=-1)            # (batch, 2H)
    doclen_2d = doc_len.reshape(1, batch).astype(jnp.int32)

    # Collapse sent_weight then context_weight (no nonlinearity in between);
    # the resulting scalar bias cancels in the softmax so it is dropped.
    w_att = (params["ctx_w"] @ params["sent_w"]).reshape(1, h2)

    # Lane-pad the classifier to 128 output lanes.
    w_fc_pad = jnp.zeros((c_pad, h2), jnp.float32).at[:num_classes].set(
        params["fc_w"]).T                                       # (2H, c_pad)
    b_fc_pad = jnp.zeros((1, c_pad), jnp.float32).at[0, :num_classes].set(
        params["fc_b"])

    args = (xcat, h0cat, doclen_2d,
            w_in[0], w_in[1], w_in[2],
            b_r, b_z, b_n,
            w_hh[0], w_hh[1], w_hh[2], b_hn,
            w_att, w_fc_pad, b_fc_pad)

    vmem = pl.BlockSpec(memory_space=pltpu.MemorySpace.VMEM)
    logits_pad, hcat = pl.pallas_call(
        _han_kernel,
        out_shape=(jax.ShapeDtypeStruct((batch, c_pad), jnp.float32),
                   jax.ShapeDtypeStruct((batch, h2), jnp.float32)),
        in_specs=[vmem] * len(args),
        out_specs=(vmem, vmem),
        scratch_shapes=[
            pltpu.VMEM((seq, batch, h2), jnp.float32),  # gx_r (fwd|bwd)
            pltpu.VMEM((seq, batch, h2), jnp.float32),  # gx_z
            pltpu.VMEM((seq, batch, h2), jnp.float32),  # gx_n
            pltpu.VMEM((seq, batch, h2), jnp.float32),  # outputs, step order
            pltpu.VMEM((seq, batch, h2), jnp.float32),  # outputs, reversed
        ],
    )(*args)
    # TODO(synk): for large batches add a batch grid ("parallel") to shard
    # across the two v7x TensorCores; unnecessary at batch=2.

    logits = logits_pad[:, :num_classes]
    h_output = jnp.stack([hcat[:, :hidden], hcat[:, hidden:]], axis=0)
    return logits, h_output


# ----------------------------------------------------------------------------
# Pure-JAX reference (mirrors the PyTorch forward exactly) for validation.
# ----------------------------------------------------------------------------
def _ref_forward(x, h0, doc_len, params):
    seq, batch, _ = x.shape
    hidden = h0.shape[-1]

    def gru_dir(wih, whh, bih, bhh, h, reverse):
        order = range(seq - 1, -1, -1) if reverse else range(seq)
        outs = [None] * seq
        for t in order:
            gx = x[t] @ wih.T + bih
            gh = h @ whh.T + bhh
            r = jax.nn.sigmoid(gx[:, :hidden] + gh[:, :hidden])
            z = jax.nn.sigmoid(gx[:, hidden:2 * hidden] + gh[:, hidden:2 * hidden])
            n = jnp.tanh(gx[:, 2 * hidden:] + r * gh[:, 2 * hidden:])
            h = (1.0 - z) * n + z * h
            outs[t] = h
        return jnp.stack(outs, 0), h

    out_f, hf = gru_dir(params["gru_wih_f"], params["gru_whh_f"],
                        params["gru_bih_f"], params["gru_bhh_f"], h0[0], False)
    out_b, hb = gru_dir(params["gru_wih_b"], params["gru_whh_b"],
                        params["gru_bih_b"], params["gru_bhh_b"], h0[1], True)
    f_output = jnp.concatenate([out_f, out_b], axis=-1)          # (seq, batch, 2H)
    h_output = jnp.stack([hf, hb], 0)

    u = f_output @ params["sent_w"].T + params["sent_b"]
    score = (u @ params["ctx_w"].T)[..., 0]                      # (seq, batch)
    mask = (jnp.arange(seq)[:, None] < doc_len[None, :]).astype(jnp.float32)
    exps = jnp.exp(score) * mask
    att = exps / jnp.sum(exps, axis=0, keepdims=True)
    weighted = jnp.sum(f_output * att[:, :, None], axis=0)       # (batch, 2H)
    logits = weighted @ params["fc_w"].T + params["fc_b"]
    return logits, h_output


def _init_params(key, word_hidden, sent_hidden, num_classes):
    in_dim = 2 * word_hidden
    h2 = 2 * sent_hidden
    keys = jax.random.split(key, 16)
    std = 0.05

    def nrm(k, shape):
        return jax.random.normal(k, shape, jnp.float32) * std

    return {
        "gru_wih_f": nrm(keys[0], (3 * sent_hidden, in_dim)),
        "gru_whh_f": nrm(keys[1], (3 * sent_hidden, sent_hidden)),
        "gru_bih_f": nrm(keys[2], (3 * sent_hidden,)),
        "gru_bhh_f": nrm(keys[3], (3 * sent_hidden,)),
        "gru_wih_b": nrm(keys[4], (3 * sent_hidden, in_dim)),
        "gru_whh_b": nrm(keys[5], (3 * sent_hidden, sent_hidden)),
        "gru_bih_b": nrm(keys[6], (3 * sent_hidden,)),
        "gru_bhh_b": nrm(keys[7], (3 * sent_hidden,)),
        "sent_w": nrm(keys[8], (h2, h2)),
        "sent_b": nrm(keys[9], (h2,)),
        "ctx_w": nrm(keys[10], (1, h2)),
        "fc_w": nrm(keys[11], (num_classes, h2)),
        "fc_b": nrm(keys[12], (num_classes,)),
    }


if __name__ == "__main__":
    seq_len = 8
    batch = 2
    word_hidden = 16
    sent_hidden = 16
    num_classes = 14

    key = jax.random.PRNGKey(0)
    k_x, k_h, k_p = jax.random.split(key, 3)

    x = jax.random.normal(k_x, (seq_len, batch, 2 * word_hidden), jnp.float32)
    h0 = jax.random.normal(k_h, (2, batch, sent_hidden), jnp.float32)
    doc_len = jnp.array([5, 8], dtype=jnp.int32)
    params = _init_params(k_p, word_hidden, sent_hidden, num_classes)

    logits, h_out = sentence_level_attention(x, h0, doc_len, params)
    jax.block_until_ready((logits, h_out))

    ref_logits, ref_h = _ref_forward(x, h0, doc_len, params)
    assert logits.shape == (batch, num_classes)
    assert h_out.shape == (2, batch, sent_hidden)
    assert jnp.allclose(logits, ref_logits, atol=2e-3, rtol=2e-3)
    assert jnp.allclose(h_out, ref_h, atol=2e-3, rtol=2e-3)

    print("KERNEL_OK")
</pallas_src>

<mosaic_0001>
module attributes {stable_mosaic.version = 11 : i64} {
  func.func @_han_kernel(%arg0: memref<16x64xf32, #tpu.memory_space<vmem>>, %arg1: memref<2x32xf32, #tpu.memory_space<vmem>>, %arg2: memref<1x2xi32, #tpu.memory_space<vmem>>, %arg3: memref<64x32xf32, #tpu.memory_space<vmem>>, %arg4: memref<64x32xf32, #tpu.memory_space<vmem>>, %arg5: memref<64x32xf32, #tpu.memory_space<vmem>>, %arg6: memref<1x32xf32, #tpu.memory_space<vmem>>, %arg7: memref<1x32xf32, #tpu.memory_space<vmem>>, %arg8: memref<1x32xf32, #tpu.memory_space<vmem>>, %arg9: memref<32x32xf32, #tpu.memory_space<vmem>>, %arg10: memref<32x32xf32, #tpu.memory_space<vmem>>, %arg11: memref<32x32xf32, #tpu.memory_space<vmem>>, %arg12: memref<1x32xf32, #tpu.memory_space<vmem>>, %arg13: memref<1x32xf32, #tpu.memory_space<vmem>>, %arg14: memref<32x128xf32, #tpu.memory_space<vmem>>, %arg15: memref<1x128xf32, #tpu.memory_space<vmem>>, %arg16: memref<2x128xf32, #tpu.memory_space<vmem>>, %arg17: memref<2x32xf32, #tpu.memory_space<vmem>>, %arg18: memref<8x2x32xf32, #tpu.memory_space<vmem>>, %arg19: memref<8x2x32xf32, #tpu.memory_space<vmem>>, %arg20: memref<8x2x32xf32, #tpu.memory_space<vmem>>, %arg21: memref<8x2x32xf32, #tpu.memory_space<vmem>>, %arg22: memref<8x2x32xf32, #tpu.memory_space<vmem>>) attributes {dimension_semantics = [], scalar_prefetch = 0 : i64, scratch_operands = 5 : i64, tpu.core_type = #tpu.core_type<tc>} {
    %c0 = arith.constant 0 : index
    %c0_0 = arith.constant 0 : index
    %0 = vector.load %arg0[%c0, %c0_0] : memref<16x64xf32, #tpu.memory_space<vmem>>, vector<16x64xf32>
    %c0_1 = arith.constant 0 : index
    %c0_2 = arith.constant 0 : index
    %1 = vector.load %arg3[%c0_1, %c0_2] : memref<64x32xf32, #tpu.memory_space<vmem>>, vector<64x32xf32>
    %cst = arith.constant dense<0.000000e+00> : vector<16x32xf32>
    %2 = tpu.matmul %0, %1, %cst {dimension_numbers = #tpu.dot_dimension_numbers<[1], [0], [0], [1], [0, 0, 1, 1], [], []>} : vector<16x64xf32>, vector<64x32xf32>, vector<16x32xf32> -> vector<16x32xf32>
    %c0_3 = arith.constant 0 : index
    %c0_4 = arith.constant 0 : index
    %3 = vector.load %arg6[%c0_3, %c0_4] : memref<1x32xf32, #tpu.memory_space<vmem>>, vector<1x32xf32>
    %4 = vector.broadcast %3 : vector<1x32xf32> to vector<16x32xf32>
    %5 = arith.addf %2, %4 : vector<16x32xf32>
    %6 = vector.shape_cast %5 : vector<16x32xf32> to vector<8x2x32xf32>
    %c0_5 = arith.constant 0 : index
    %c0_6 = arith.constant 0 : index
    %c0_7 = arith.constant 0 : index
    %7 = vector.load %arg18[%c0_5, %c0_6, %c0_7] : memref<8x2x32xf32, #tpu.memory_space<vmem>>, vector<8x2x32xf32>
    tpu.vector_store %arg18[%c0_5, %c0_6, %c0_7], %6 {strides = array<i32>} : memref<8x2x32xf32, #tpu.memory_space<vmem>>, vector<8x2x32xf32>,
    %c0_8 = arith.constant 0 : index
    %c0_9 = arith.constant 0 : index
    %8 = vector.load %arg4[%c0_8, %c0_9] : memref<64x32xf32, #tpu.memory_space<vmem>>, vector<64x32xf32>
    %cst_10 = arith.constant dense<0.000000e+00> : vector<16x32xf32>
    %9 = tpu.matmul %0, %8, %cst_10 {dimension_numbers = #tpu.dot_dimension_numbers<[1], [0], [0], [1], [0, 0, 1, 1], [], []>} : vector<16x64xf32>, vector<64x32xf32>, vector<16x32xf32> -> vector<16x32xf32>
    %c0_11 = arith.constant 0 : index
    %c0_12 = arith.constant 0 : index
    %10 = vector.load %arg7[%c0_11, %c0_12] : memref<1x32xf32, #tpu.memory_space<vmem>>, vector<1x32xf32>
    %11 = vector.broadcast %10 : vector<1x32xf32> to vector<16x32xf32>
    %12 = arith.addf %9, %11 : vector<16x32xf32>
    %13 = vector.shape_cast %12 : vector<16x32xf32> to vector<8x2x32xf32>
    %c0_13 = arith.constant 0 : index
    %c0_14 = arith.constant 0 : index
    %c0_15 = arith.constant 0 : index
    %14 = vector.load %arg19[%c0_13, %c0_14, %c0_15] : memref<8x2x32xf32, #tpu.memory_space<vmem>>, vector<8x2x32xf32>
    tpu.vector_store %arg19[%c0_13, %c0_14, %c0_15], %13 {strides = array<i32>} : memref<8x2x32xf32, #tpu.memory_space<vmem>>, vector<8x2x32xf32>,
    %c0_16 = arith.constant 0 : index
    %c0_17 = arith.constant 0 : index
    %15 = vector.load %arg5[%c0_16, %c0_17] : memref<64x32xf32, #tpu.memory_space<vmem>>, vector<64x32xf32>
    %cst_18 = arith.constant dense<0.000000e+00> : vector<16x32xf32>
    %16 = tpu.matmul %0, %15, %cst_18 {dimension_numbers = #tpu.dot_dimension_numbers<[1], [0], [0], [1], [0, 0, 1, 1], [], []>} : vector<16x64xf32>, vector<64x32xf32>, vector<16x32xf32> -> vector<16x32xf32>
    %c0_19 = arith.constant 0 : index
    %c0_20 = arith.constant 0 : index
    %17 = vector.load %arg8[%c0_19, %c0_20] : memref<1x32xf32, #tpu.memory_space<vmem>>, vector<1x32xf32>
    %18 = vector.broadcast %17 : vector<1x32xf32> to vector<16x32xf32>
    %19 = arith.addf %16, %18 : vector<16x32xf32>
    %20 = vector.shape_cast %19 : vector<16x32xf32> to vector<8x2x32xf32>
    %c0_21 = arith.constant 0 : index
    %c0_22 = arith.constant 0 : index
    %c0_23 = arith.constant 0 : index
    %21 = vector.load %arg20[%c0_21, %c0_22, %c0_23] : memref<8x2x32xf32, #tpu.memory_space<vmem>>, vector<8x2x32xf32>
    tpu.vector_store %arg20[%c0_21, %c0_22, %c0_23], %20 {strides = array<i32>} : memref<8x2x32xf32, #tpu.memory_space<vmem>>, vector<8x2x32xf32>,
    %c0_24 = arith.constant 0 : index
    %c0_25 = arith.constant 0 : index
    %22 = vector.load %arg9[%c0_24, %c0_25] : memref<32x32xf32, #tpu.memory_space<vmem>>, vector<32x32xf32>
    %c0_26 = arith.constant 0 : index
    %c0_27 = arith.constant 0 : index
    %23 = vector.load %arg10[%c0_26, %c0_27] : memref<32x32xf32, #tpu.memory_space<vmem>>, vector<32x32xf32>
    %c0_28 = arith.constant 0 : index
    %c0_29 = arith.constant 0 : index
    %24 = vector.load %arg11[%c0_28, %c0_29] : memref<32x32xf32, #tpu.memory_space<vmem>>, vector<32x32xf32>
    %c0_30 = arith.constant 0 : index
    %c0_31 = arith.constant 0 : index
    %25 = vector.load %arg12[%c0_30, %c0_31] : memref<1x32xf32, #tpu.memory_space<vmem>>, vector<1x32xf32>
    %c0_32 = arith.constant 0 : index
    %c0_33 = arith.constant 0 : index
    %26 = vector.load %arg1[%c0_32, %c0_33] : memref<2x32xf32, #tpu.memory_space<vmem>>, vector<2x32xf32>
    %c0_i32 = arith.constant 0 : i32
    %cst_34 = arith.constant dense<0.000000e+00> : vector<2x32xf32>
    %27 = tpu.matmul %26, %22, %cst_34 {dimension_numbers = #tpu.dot_dimension_numbers<[1], [0], [0], [1], [0, 0, 1, 1], [], []>} : vector<2x32xf32>, vector<32x32xf32>, vector<2x32xf32> -> vector<2x32xf32>
    %cst_35 = arith.constant dense<0.000000e+00> : vector<2x32xf32>
    %28 = tpu.matmul %26, %23, %cst_35 {dimension_numbers = #tpu.dot_dimension_numbers<[1], [0], [0], [1], [0, 0, 1, 1], [], []>} : vector<2x32xf32>, vector<32x32xf32>, vector<2x32xf32> -> vector<2x32xf32>
    %cst_36 = arith.constant dense<0.000000e+00> : vector<2x32xf32>
    %29 = tpu.matmul %26, %24, %cst_36 {dimension_numbers = #tpu.dot_dimension_numbers<[1], [0], [0], [1], [0, 0, 1, 1], [], []>} : vector<2x32xf32>, vector<32x32xf32>, vector<2x32xf32> -> vector<2x32xf32>
    %30 = arith.index_cast %c0_i32 : i32 to index
    %c0_37 = arith.constant 0 : index
    %c0_38 = arith.constant 0 : index
    %31 = vector.load %arg18[%30, %c0_37, %c0_38] : memref<8x2x32xf32, #tpu.memory_space<vmem>>, vector<1x2x32xf32>
    %32 = vector.shape_cast %31 : vector<1x2x32xf32> to vector<2x32xf32>
    %33 = arith.addf %32, %27 : vector<2x32xf32>
    %34 = arith.negf %33 : vector<2x32xf32>
    %35 = math.exp %34 : vector<2x32xf32>
    %cst_39 = arith.constant 1.000000e+00 : f32
    %36 = vector.broadcast %cst_39 : f32 to vector<2x32xf32>
    %37 = arith.addf %36, %35 : vector<2x32xf32>
    %38 = arith.divf %36, %37 : vector<2x32xf32>
    %39 = arith.index_cast %c0_i32 : i32 to index
    %c0_40 = arith.constant 0 : index
    %c0_41 = arith.constant 0 : index
    %40 = vector.load %arg19[%39, %c0_40, %c0_41] : memref<8x2x32xf32, #tpu.memory_space<vmem>>, vector<1x2x32xf32>
    %41 = vector.shape_cast %40 : vector<1x2x32xf32> to vector<2x32xf32>
    %42 = arith.addf %41, %28 : vector<2x32xf32>
    %43 = arith.negf %42 : vector<2x32xf32>
    %44 = math.exp %43 : vector<2x32xf32>
    %cst_42 = arith.constant 1.000000e+00 : f32
    %45 = vector.broadcast %cst_42 : f32 to vector<2x32xf32>
    %46 = arith.addf %45, %44 : vector<2x32xf32>
    %47 = arith.divf %45, %46 : vector<2x32xf32>
    %48 = arith.index_cast %c0_i32 : i32 to index
    %c0_43 = arith.constant 0 : index
    %c0_44 = arith.constant 0 : index
    %49 = vector.load %arg20[%48, %c0_43, %c0_44] : memref<8x2x32xf32, #tpu.memory_space<vmem>>, vector<1x2x32xf32>
    %50 = vector.shape_cast %49 : vector<1x2x32xf32> to vector<2x32xf32>
    %51 = vector.broadcast %25 : vector<1x32xf32> to vector<2x32xf32>
    %52 = arith.addf %29, %51 : vector<2x32xf32>
    %53 = arith.mulf %38, %52 : vector<2x32xf32>
    %54 = arith.addf %50, %53 : vector<2x32xf32>
    %55 = math.tanh %54 : vector<2x32xf32>
    %cst_45 = arith.constant 1.000000e+00 : f32
    %56 = vector.broadcast %cst_45 : f32 to vector<2x32xf32>
    %57 = arith.subf %56, %47 : vector<2x32xf32>
    %58 = arith.mulf %57, %55 : vector<2x32xf32>
    %59 = arith.mulf %47, %26 : vector<2x32xf32>
    %60 = arith.addf %58, %59 : vector<2x32xf32>
    %61 = arith.index_cast %c0_i32 : i32 to index
    %c0_46 = arith.constant 0 : index
    %c0_47 = arith.constant 0 : index
    %62 = vector.load %arg21[%61, %c0_46, %c0_47] : memref<8x2x32xf32, #tpu.memory_space<vmem>>, vector<1x2x32xf32>
    %63 = vector.shape_cast %62 : vector<1x2x32xf32> to vector<2x32xf32>
    %64 = vector.shape_cast %60 : vector<2x32xf32> to vector<1x2x32xf32>
    tpu.vector_store %arg21[%61, %c0_46, %c0_47], %64 {strides = array<i32>} : memref<8x2x32xf32, #tpu.memory_space<vmem>>, vector<1x2x32xf32>,
    %c7_i32 = arith.constant 7 : i32
    %65 = arith.subi %c7_i32, %c0_i32 : i32
    %66 = arith.index_cast %65 : i32 to index
    %c0_48 = arith.constant 0 : index
    %c0_49 = arith.constant 0 : index
    %67 = vector.load %arg22[%66, %c0_48, %c0_49] : memref<8x2x32xf32, #tpu.memory_space<vmem>>, vector<1x2x32xf32>
    %68 = vector.shape_cast %67 : vector<1x2x32xf32> to vector<2x32xf32>
    %69 = vector.shape_cast %60 : vector<2x32xf32> to vector<1x2x32xf32>
    tpu.vector_store %arg22[%66, %c0_48, %c0_49], %69 {strides = array<i32>} : memref<8x2x32xf32, #tpu.memory_space<vmem>>, vector<1x2x32xf32>,
    %c1_i32 = arith.constant 1 : i32
    %cst_50 = arith.constant dense<0.000000e+00> : vector<2x32xf32>
    %70 = tpu.matmul %60, %22, %cst_50 {dimension_numbers = #tpu.dot_dimension_numbers<[1], [0], [0], [1], [0, 0, 1, 1], [], []>} : vector<2x32xf32>, vector<32x32xf32>, vector<2x32xf32> -> vector<2x32xf32>
    %cst_51 = arith.constant dense<0.000000e+00> : vector<2x32xf32>
    %71 = tpu.matmul %60, %23, %cst_51 {dimension_numbers = #tpu.dot_dimension_numbers<[1], [0], [0], [1], [0, 0, 1, 1], [], []>} : vector<2x32xf32>, vector<32x32xf32>, vector<2x32xf32> -> vector<2x32xf32>
    %cst_52 = arith.constant dense<0.000000e+00> : vector<2x32xf32>
    %72 = tpu.matmul %60, %24, %cst_52 {dimension_numbers = #tpu.dot_dimension_numbers<[1], [0], [0], [1], [0, 0, 1, 1], [], []>} : vector<2x32xf32>, vector<32x32xf32>, vector<2x32xf32> -> vector<2x32xf32>
    %73 = arith.index_cast %c1_i32 : i32 to index
    %c0_53 = arith.constant 0 : index
    %c0_54 = arith.constant 0 : index
    %74 = vector.load %arg18[%73, %c0_53, %c0_54] : memref<8x2x32xf32, #tpu.memory_space<vmem>>, vector<1x2x32xf32>
    %75 = vector.shape_cast %74 : vector<1x2x32xf32> to vector<2x32xf32>
    %76 = arith.addf %75, %70 : vector<2x32xf32>
    %77 = arith.negf %76 : vector<2x32xf32>
    %78 = math.exp %77 : vector<2x32xf32>
    %cst_55 = arith.constant 1.000000e+00 : f32
    %79 = vector.broadcast %cst_55 : f32 to vector<2x32xf32>
    %80 = arith.addf %79, %78 : vector<2x32xf32>
    %81 = arith.divf %79, %80 : vector<2x32xf32>
    %82 = arith.index_cast %c1_i32 : i32 to index
    %c0_56 = arith.constant 0 : index
    %c0_57 = arith.constant 0 : index
    %83 = vector.load %arg19[%82, %c0_56, %c0_57] : memref<8x2x32xf32, #tpu.memory_space<vmem>>, vector<1x2x32xf32>
    %84 = vector.shape_cast %83 : vector<1x2x32xf32> to vector<2x32xf32>
    %85 = arith.addf %84, %71 : vector<2x32xf32>
    %86 = arith.negf %85 : vector<2x32xf32>
    %87 = math.exp %86 : vector<2x32xf32>
    %cst_58 = arith.constant 1.000000e+00 : f32
    %88 = vector.broadcast %cst_58 : f32 to vector<2x32xf32>
    %89 = arith.addf %88, %87 : vector<2x32xf32>
    %90 = arith.divf %88, %89 : vector<2x32xf32>
    %91 = arith.index_cast %c1_i32 : i32 to index
    %c0_59 = arith.constant 0 : index
    %c0_60 = arith.constant 0 : index
    %92 = vector.load %arg20[%91, %c0_59, %c0_60] : memref<8x2x32xf32, #tpu.memory_space<vmem>>, vector<1x2x32xf32>
    %93 = vector.shape_cast %92 : vector<1x2x32xf32> to vector<2x32xf32>
    %94 = vector.broadcast %25 : vector<1x32xf32> to vector<2x32xf32>
    %95 = arith.addf %72, %94 : vector<2x32xf32>
    %96 = arith.mulf %81, %95 : vector<2x32xf32>
    %97 = arith.addf %93, %96 : vector<2x32xf32>
    %98 = math.tanh %97 : vector<2x32xf32>
    %cst_61 = arith.constant 1.000000e+00 : f32
    %99 = vector.broadcast %cst_61 : f32 to vector<2x32xf32>
    %100 = arith.subf %99, %90 : vector<2x32xf32>
    %101 = arith.mulf %100, %98 : vector<2x32xf32>
    %102 = arith.mulf %90, %60 : vector<2x32xf32>
    %103 = arith.addf %101, %102 : vector<2x32xf32>
    %104 = arith.index_cast %c1_i32 : i32 to index
    %c0_62 = arith.constant 0 : index
    %c0_63 = arith.constant 0 : index
    %105 = vector.load %arg21[%104, %c0_62, %c0_63] : memref<8x2x32xf32, #tpu.memory_space<vmem>>, vector<1x2x32xf32>
    %106 = vector.shape_cast %105 : vector<1x2x32xf32> to vector<2x32xf32>
    %107 = vector.shape_cast %103 : vector<2x32xf32> to vector<1x2x32xf32>
    tpu.vector_store %arg21[%104, %c0_62, %c0_63], %107 {strides = array<i32>} : memref<8x2x32xf32, #tpu.memory_space<vmem>>, vector<1x2x32xf32>,
    %c7_i32_64 = arith.constant 7 : i32
    %108 = arith.subi %c7_i32_64, %c1_i32 : i32
    %109 = arith.index_cast %108 : i32 to index
    %c0_65 = arith.constant 0 : index
    %c0_66 = arith.constant 0 : index
    %110 = vector.load %arg22[%109, %c0_65, %c0_66] : memref<8x2x32xf32, #tpu.memory_space<vmem>>, vector<1x2x32xf32>
    %111 = vector.shape_cast %110 : vector<1x2x32xf32> to vector<2x32xf32>
    %112 = vector.shape_cast %103 : vector<2x32xf32> to vector<1x2x32xf32>
    tpu.vector_store %arg22[%109, %c0_65, %c0_66], %112 {strides = array<i32>} : memref<8x2x32xf32, #tpu.memory_space<vmem>>, vector<1x2x32xf32>,
    %c2_i32 = arith.constant 2 : i32
    %cst_67 = arith.constant dense<0.000000e+00> : vector<2x32xf32>
    %113 = tpu.matmul %103, %22, %cst_67 {dimension_numbers = #tpu.dot_dimension_numbers<[1], [0], [0], [1], [0, 0, 1, 1], [], []>} : vector<2x32xf32>, vector<32x32xf32>, vector<2x32xf32> -> vector<2x32xf32>
    %cst_68 = arith.constant dense<0.000000e+00> : vector<2x32xf32>
    %114 = tpu.matmul %103, %23, %cst_68 {dimension_numbers = #tpu.dot_dimension_numbers<[1], [0], [0], [1], [0, 0, 1, 1], [], []>} : vector<2x32xf32>, vector<32x32xf32>, vector<2x32xf32> -> vector<2x32xf32>
    %cst_69 = arith.constant dense<0.000000e+00> : vector<2x32xf32>
    %115 = tpu.matmul %103, %24, %cst_69 {dimension_numbers = #tpu.dot_dimension_numbers<[1], [0], [0], [1], [0, 0, 1, 1], [], []>} : vector<2x32xf32>, vector<32x32xf32>, vector<2x32xf32> -> vector<2x32xf32>
    %116 = arith.index_cast %c2_i32 : i32 to index
    %c0_70 = arith.constant 0 : index
    %c0_71 = arith.constant 0 : index
    %117 = vector.load %arg18[%116, %c0_70, %c0_71] : memref<8x2x32xf32, #tpu.memory_space<vmem>>, vector<1x2x32xf32>
    %118 = vector.shape_cast %117 : vector<1x2x32xf32> to vector<2x32xf32>
    %119 = arith.addf %118, %113 : vector<2x32xf32>
    %120 = arith.negf %119 : vector<2x32xf32>
    %121 = math.exp %120 : vector<2x32xf32>
    %cst_72 = arith.constant 1.000000e+00 : f32
    %122 = vector.broadcast %cst_72 : f32 to vector<2x32xf32>
    %123 = arith.addf %122, %121 : vector<2x32xf32>
    %124 = arith.divf %122, %123 : vector<2x32xf32>
    %125 = arith.index_cast %c2_i32 : i32 to index
    %c0_73 = arith.constant 0 : index
    %c0_74 = arith.constant 0 : index
    %126 = vector.load %arg19[%125, %c0_73, %c0_74] : memref<8x2x32xf32, #tpu.memory_space<vmem>>, vector<1x2x32xf32>
    %127 = vector.shape_cast %126 : vector<1x2x32xf32> to vector<2x32xf32>
    %128 = arith.addf %127, %114 : vector<2x32xf32>
    %129 = arith.negf %128 : vector<2x32xf32>
    %130 = math.exp %129 : vector<2x32xf32>
    %cst_75 = arith.constant 1.000000e+00 : f32
    %131 = vector.broadcast %cst_75 : f32 to vector<2x32xf32>
    %132 = arith.addf %131, %130 : vector<2x32xf32>
    %133 = arith.divf %131, %132 : vector<2x32xf32>
    %134 = arith.index_cast %c2_i32 : i32 to index
    %c0_76 = arith.constant 0 : index
    %c0_77 = arith.constant 0 : index
    %135 = vector.load %arg20[%134, %c0_76, %c0_77] : memref<8x2x32xf32, #tpu.memory_space<vmem>>, vector<1x2x32xf32>
    %136 = vector.shape_cast %135 : vector<1x2x32xf32> to vector<2x32xf32>
    %137 = vector.broadcast %25 : vector<1x32xf32> to vector<2x32xf32>
    %138 = arith.addf %115, %137 : vector<2x32xf32>
    %139 = arith.mulf %124, %138 : vector<2x32xf32>
    %140 = arith.addf %136, %139 : vector<2x32xf32>
    %141 = math.tanh %140 : vector<2x32xf32>
    %cst_78 = arith.constant 1.000000e+00 : f32
    %142 = vector.broadcast %cst_78 : f32 to vector<2x32xf32>
    %143 = arith.subf %142, %133 : vector<2x32xf32>
    %144 = arith.mulf %143, %141 : vector<2x32xf32>
    %145 = arith.mulf %133, %103 : vector<2x32xf32>
    %146 = arith.addf %144, %145 : vector<2x32xf32>
    %147 = arith.index_cast %c2_i32 : i32 to index
    %c0_79 = arith.constant 0 : index
    %c0_80 = arith.constant 0 : index
    %148 = vector.load %arg21[%147, %c0_79, %c0_80] : memref<8x2x32xf32, #tpu.memory_space<vmem>>, vector<1x2x32xf32>
    %149 = vector.shape_cast %148 : vector<1x2x32xf32> to vector<2x32xf32>
    %150 = vector.shape_cast %146 : vector<2x32xf32> to vector<1x2x32xf32>
    tpu.vector_store %arg21[%147, %c0_79, %c0_80], %150 {strides = array<i32>} : memref<8x2x32xf32, #tpu.memory_space<vmem>>, vector<1x2x32xf32>,
    %c7_i32_81 = arith.constant 7 : i32
    %151 = arith.subi %c7_i32_81, %c2_i32 : i32
    %152 = arith.index_cast %151 : i32 to index
    %c0_82 = arith.constant 0 : index
    %c0_83 = arith.constant 0 : index
    %153 = vector.load %arg22[%152, %c0_82, %c0_83] : memref<8x2x32xf32, #tpu.memory_space<vmem>>, vector<1x2x32xf32>
    %154 = vector.shape_cast %153 : vector<1x2x32xf32> to vector<2x32xf32>
    %155 = vector.shape_cast %146 : vector<2x32xf32> to vector<1x2x32xf32>
    tpu.vector_store %arg22[%152, %c0_82, %c0_83], %155 {strides = array<i32>} : memref<8x2x32xf32, #tpu.memory_space<vmem>>, vector<1x2x32xf32>,
    %c3_i32 = arith.constant 3 : i32
    %cst_84 = arith.constant dense<0.000000e+00> : vector<2x32xf32>
    %156 = tpu.matmul %146, %22, %cst_84 {dimension_numbers = #tpu.dot_dimension_numbers<[1], [0], [0], [1], [0, 0, 1, 1], [], []>} : vector<2x32xf32>, vector<32x32xf32>, vector<2x32xf32> -> vector<2x32xf32>
    %cst_85 = arith.constant dense<0.000000e+00> : vector<2x32xf32>
    %157 = tpu.matmul %146, %23, %cst_85 {dimension_numbers = #tpu.dot_dimension_numbers<[1], [0], [0], [1], [0, 0, 1, 1], [], []>} : vector<2x32xf32>, vector<32x32xf32>, vector<2x32xf32> -> vector<2x32xf32>
    %cst_86 = arith.constant dense<0.000000e+00> : vector<2x32xf32>
    %158 = tpu.matmul %146, %24, %cst_86 {dimension_numbers = #tpu.dot_dimension_numbers<[1], [0], [0], [1], [0, 0, 1, 1], [], []>} : vector<2x32xf32>, vector<32x32xf32>, vector<2x32xf32> -> vector<2x32xf32>
    %159 = arith.index_cast %c3_i32 : i32 to index
    %c0_87 = arith.constant 0 : index
    %c0_88 = arith.constant 0 : index
    %160 = vector.load %arg18[%159, %c0_87, %c0_88] : memref<8x2x32xf32, #tpu.memory_space<vmem>>, vector<1x2x32xf32>
    %161 = vector.shape_cast %160 : vector<1x2x32xf32> to vector<2x32xf32>
    %162 = arith.addf %161, %156 : vector<2x32xf32>
    %163 = arith.negf %162 : vector<2x32xf32>
    %164 = math.exp %163 : vector<2x32xf32>
    %cst_89 = arith.constant 1.000000e+00 : f32
    %165 = vector.broadcast %cst_89 : f32 to vector<2x32xf32>
    %166 = arith.addf %165, %164 : vector<2x32xf32>
    %167 = arith.divf %165, %166 : vector<2x32xf32>
    %168 = arith.index_cast %c3_i32 : i32 to index
    %c0_90 = arith.constant 0 : index
    %c0_91 = arith.constant 0 : index
    %169 = vector.load %arg19[%168, %c0_90, %c0_91] : memref<8x2x32xf32, #tpu.memory_space<vmem>>, vector<1x2x32xf32>
    %170 = vector.shape_cast %169 : vector<1x2x32xf32> to vector<2x32xf32>
    %171 = arith.addf %170, %157 : vector<2x32xf32>
    %172 = arith.negf %171 : vector<2x32xf32>
    %173 = math.exp %172 : vector<2x32xf32>
    %cst_92 = arith.constant 1.000000e+00 : f32
    %174 = vector.broadcast %cst_92 : f32 to vector<2x32xf32>
    %175 = arith.addf %174, %173 : vector<2x32xf32>
    %176 = arith.divf %174, %175 : vector<2x32xf32>
    %177 = arith.index_cast %c3_i32 : i32 to index
    %c0_93 = arith.constant 0 : index
    %c0_94 = arith.constant 0 : index
    %178 = vector.load %arg20[%177, %c0_93, %c0_94] : memref<8x2x32xf32, #tpu.memory_space<vmem>>, vector<1x2x32xf32>
    %179 = vector.shape_cast %178 : vector<1x2x32xf32> to vector<2x32xf32>
    %180 = vector.broadcast %25 : vector<1x32xf32> to vector<2x32xf32>
    %181 = arith.addf %158, %180 : vector<2x32xf32>
    %182 = arith.mulf %167, %181 : vector<2x32xf32>
    %183 = arith.addf %179, %182 : vector<2x32xf32>
    %184 = math.tanh %183 : vector<2x32xf32>
    %cst_95 = arith.constant 1.000000e+00 : f32
    %185 = vector.broadcast %cst_95 : f32 to vector<2x32xf32>
    %186 = arith.subf %185, %176 : vector<2x32xf32>
    %187 = arith.mulf %186, %184 : vector<2x32xf32>
    %188 = arith.mulf %176, %146 : vector<2x32xf32>
    %189 = arith.addf %187, %188 : vector<2x32xf32>
    %190 = arith.index_cast %c3_i32 : i32 to index
    %c0_96 = arith.constant 0 : index
    %c0_97 = arith.constant 0 : index
    %191 = vector.load %arg21[%190, %c0_96, %c0_97] : memref<8x2x32xf32, #tpu.memory_space<vmem>>, vector<1x2x32xf32>
    %192 = vector.shape_cast %191 : vector<1x2x32xf32> to vector<2x32xf32>
    %193 = vector.shape_cast %189 : vector<2x32xf32> to vector<1x2x32xf32>
    tpu.vector_store %arg21[%190, %c0_96, %c0_97], %193 {strides = array<i32>} : memref<8x2x32xf32, #tpu.memory_space<vmem>>, vector<1x2x32xf32>,
    %c7_i32_98 = arith.constant 7 : i32
    %194 = arith.subi %c7_i32_98, %c3_i32 : i32
    %195 = arith.index_cast %194 : i32 to index
    %c0_99 = arith.constant 0 : index
    %c0_100 = arith.constant 0 : index
    %196 = vector.load %arg22[%195, %c0_99, %c0_100] : memref<8x2x32xf32, #tpu.memory_space<vmem>>, vector<1x2x32xf32>
    %197 = vector.shape_cast %196 : vector<1x2x32xf32> to vector<2x32xf32>
    %198 = vector.shape_cast %189 : vector<2x32xf32> to vector<1x2x32xf32>
    tpu.vector_store %arg22[%195, %c0_99, %c0_100], %198 {strides = array<i32>} : memref<8x2x32xf32, #tpu.memory_space<vmem>>, vector<1x2x32xf32>,
    %c4_i32 = arith.constant 4 : i32
    %cst_101 = arith.constant dense<0.000000e+00> : vector<2x32xf32>
    %199 = tpu.matmul %189, %22, %cst_101 {dimension_numbers = #tpu.dot_dimension_numbers<[1], [0], [0], [1], [0, 0, 1, 1], [], []>} : vector<2x32xf32>, vector<32x32xf32>, vector<2x32xf32> -> vector<2x32xf32>
    %cst_102 = arith.constant dense<0.000000e+00> : vector<2x32xf32>
    %200 = tpu.matmul %189, %23, %cst_102 {dimension_numbers = #tpu.dot_dimension_numbers<[1], [0], [0], [1], [0, 0, 1, 1], [], []>} : vector<2x32xf32>, vector<32x32xf32>, vector<2x32xf32> -> vector<2x32xf32>
    %cst_103 = arith.constant dense<0.000000e+00> : vector<2x32xf32>
    %201 = tpu.matmul %189, %24, %cst_103 {dimension_numbers = #tpu.dot_dimension_numbers<[1], [0], [0], [1], [0, 0, 1, 1], [], []>} : vector<2x32xf32>, vector<32x32xf32>, vector<2x32xf32> -> vector<2x32xf32>
    %202 = arith.index_cast %c4_i32 : i32 to index
    %c0_104 = arith.constant 0 : index
    %c0_105 = arith.constant 0 : index
    %203 = vector.load %arg18[%202, %c0_104, %c0_105] : memref<8x2x32xf32, #tpu.memory_space<vmem>>, vector<1x2x32xf32>
    %204 = vector.shape_cast %203 : vector<1x2x32xf32> to vector<2x32xf32>
    %205 = arith.addf %204, %199 : vector<2x32xf32>
    %206 = arith.negf %205 : vector<2x32xf32>
    %207 = math.exp %206 : vector<2x32xf32>
    %cst_106 = arith.constant 1.000000e+00 : f32
    %208 = vector.broadcast %cst_106 : f32 to vector<2x32xf32>
    %209 = arith.addf %208, %207 : vector<2x32xf32>
    %210 = arith.divf %208, %209 : vector<2x32xf32>
    %211 = arith.index_cast %c4_i32 : i32 to index
    %c0_107 = arith.constant 0 : index
    %c0_108 = arith.constant 0 : index
    %212 = vector.load %arg19[%211, %c0_107, %c0_108] : memref<8x2x32xf32, #tpu.memory_space<vmem>>, vector<1x2x32xf32>
    %213 = vector.shape_cast %212 : vector<1x2x32xf32> to vector<2x32xf32>
    %214 = arith.addf %213, %200 : vector<2x32xf32>
    %215 = arith.negf %214 : vector<2x32xf32>
    %216 = math.exp %215 : vector<2x32xf32>
    %cst_109 = arith.constant 1.000000e+00 : f32
    %217 = vector.broadcast %cst_109 : f32 to vector<2x32xf32>
    %218 = arith.addf %217, %216 : vector<2x32xf32>
    %219 = arith.divf %217, %218 : vector<2x32xf32>
    %220 = arith.index_cast %c4_i32 : i32 to index
    %c0_110 = arith.constant 0 : index
    %c0_111 = arith.constant 0 : index
    %221 = vector.load %arg20[%220, %c0_110, %c0_111] : memref<8x2x32xf32, #tpu.memory_space<vmem>>, vector<1x2x32xf32>
    %222 = vector.shape_cast %221 : vector<1x2x32xf32> to vector<2x32xf32>
    %223 = vector.broadcast %25 : vector<1x32xf32> to vector<2x32xf32>
    %224 = arith.addf %201, %223 : vector<2x32xf32>
    %225 = arith.mulf %210, %224 : vector<2x32xf32>
    %226 = arith.addf %222, %225 : vector<2x32xf32>
    %227 = math.tanh %226 : vector<2x32xf32>
    %cst_112 = arith.constant 1.000000e+00 : f32
    %228 = vector.broadcast %cst_112 : f32 to vector<2x32xf32>
    %229 = arith.subf %228, %219 : vector<2x32xf32>
    %230 = arith.mulf %229, %227 : vector<2x32xf32>
    %231 = arith.mulf %219, %189 : vector<2x32xf32>
    %232 = arith.addf %230, %231 : vector<2x32xf32>
    %233 = arith.index_cast %c4_i32 : i32 to index
    %c0_113 = arith.constant 0 : index
    %c0_114 = arith.constant 0 : index
    %234 = vector.load %arg21[%233, %c0_113, %c0_114] : memref<8x2x32xf32, #tpu.memory_space<vmem>>, vector<1x2x32xf32>
    %235 = vector.shape_cast %234 : vector<1x2x32xf32> to vector<2x32xf32>
    %236 = vector.shape_cast %232 : vector<2x32xf32> to vector<1x2x32xf32>
    tpu.vector_store %arg21[%233, %c0_113, %c0_114], %236 {strides = array<i32>} : memref<8x2x32xf32, #tpu.memory_space<vmem>>, vector<1x2x32xf32>,
    %c7_i32_115 = arith.constant 7 : i32
    %237 = arith.subi %c7_i32_115, %c4_i32 : i32
    %238 = arith.index_cast %237 : i32 to index
    %c0_116 = arith.constant 0 : index
    %c0_117 = arith.constant 0 : index
    %239 = vector.load %arg22[%238, %c0_116, %c0_117] : memref<8x2x32xf32, #tpu.memory_space<vmem>>, vector<1x2x32xf32>
    %240 = vector.shape_cast %239 : vector<1x2x32xf32> to vector<2x32xf32>
    %241 = vector.shape_cast %232 : vector<2x32xf32> to vector<1x2x32xf32>
    tpu.vector_store %arg22[%238, %c0_116, %c0_117], %241 {strides = array<i32>} : memref<8x2x32xf32, #tpu.memory_space<vmem>>, vector<1x2x32xf32>,
    %c5_i32 = arith.constant 5 : i32
    %cst_118 = arith.constant dense<0.000000e+00> : vector<2x32xf32>
    %242 = tpu.matmul %232, %22, %cst_118 {dimension_numbers = #tpu.dot_dimension_numbers<[1], [0], [0], [1], [0, 0, 1, 1], [], []>} : vector<2x32xf32>, vector<32x32xf32>, vector<2x32xf32> -> vector<2x32xf32>
    %cst_119 = arith.constant dense<0.000000e+00> : vector<2x32xf32>
    %243 = tpu.matmul %232, %23, %cst_119 {dimension_numbers = #tpu.dot_dimension_numbers<[1], [0], [0], [1], [0, 0, 1, 1], [], []>} : vector<2x32xf32>, vector<32x32xf32>, vector<2x32xf32> -> vector<2x32xf32>
    %cst_120 = arith.constant dense<0.000000e+00> : vector<2x32xf32>
    %244 = tpu.matmul %232, %24, %cst_120 {dimension_numbers = #tpu.dot_dimension_numbers<[1], [0], [0], [1], [0, 0, 1, 1], [], []>} : vector<2x32xf32>, vector<32x32xf32>, vector<2x32xf32> -> vector<2x32xf32>
    %245 = arith.index_cast %c5_i32 : i32 to index
    %c0_121 = arith.constant 0 : index
    %c0_122 = arith.constant 0 : index
    %246 = vector.load %arg18[%245, %c0_121, %c0_122] : memref<8x2x32xf32, #tpu.memory_space<vmem>>, vector<1x2x32xf32>
    %247 = vector.shape_cast %246 : vector<1x2x32xf32> to vector<2x32xf32>
    %248 = arith.addf %247, %242 : vector<2x32xf32>
    %249 = arith.negf %248 : vector<2x32xf32>
    %250 = math.exp %249 : vector<2x32xf32>
    %cst_123 = arith.constant 1.000000e+00 : f32
    %251 = vector.broadcast %cst_123 : f32 to vector<2x32xf32>
    %252 = arith.addf %251, %250 : vector<2x32xf32>
    %253 = arith.divf %251, %252 : vector<2x32xf32>
    %254 = arith.index_cast %c5_i32 : i32 to index
    %c0_124 = arith.constant 0 : index
    %c0_125 = arith.constant 0 : index
    %255 = vector.load %arg19[%254, %c0_124, %c0_125] : memref<8x2x32xf32, #tpu.memory_space<vmem>>, vector<1x2x32xf32>
    %256 = vector.shape_cast %255 : vector<1x2x32xf32> to vector<2x32xf32>
    %257 = arith.addf %256, %243 : vector<2x32xf32>
    %258 = arith.negf %257 : vector<2x32xf32>
    %259 = math.exp %258 : vector<2x32xf32>
    %cst_126 = arith.constant 1.000000e+00 : f32
    %260 = vector.broadcast %cst_126 : f32 to vector<2x32xf32>
    %261 = arith.addf %260, %259 : vector<2x32xf32>
    %262 = arith.divf %260, %261 : vector<2x32xf32>
    %263 = arith.index_cast %c5_i32 : i32 to index
    %c0_127 = arith.constant 0 : index
    %c0_128 = arith.constant 0 : index
    %264 = vector.load %arg20[%263, %c0_127, %c0_128] : memref<8x2x32xf32, #tpu.memory_space<vmem>>, vector<1x2x32xf32>
    %265 = vector.shape_cast %264 : vector<1x2x32xf32> to vector<2x32xf32>
    %266 = vector.broadcast %25 : vector<1x32xf32> to vector<2x32xf32>
    %267 = arith.addf %244, %266 : vector<2x32xf32>
    %268 = arith.mulf %253, %267 : vector<2x32xf32>
    %269 = arith.addf %265, %268 : vector<2x32xf32>
    %270 = math.tanh %269 : vector<2x32xf32>
    %cst_129 = arith.constant 1.000000e+00 : f32
    %271 = vector.broadcast %cst_129 : f32 to vector<2x32xf32>
    %272 = arith.subf %271, %262 : vector<2x32xf32>
    %273 = arith.mulf %272, %270 : vector<2x32xf32>
    %274 = arith.mulf %262, %232 : vector<2x32xf32>
    %275 = arith.addf %273, %274 : vector<2x32xf32>
    %276 = arith.index_cast %c5_i32 : i32 to index
    %c0_130 = arith.constant 0 : index
    %c0_131 = arith.constant 0 : index
    %277 = vector.load %arg21[%276, %c0_130, %c0_131] : memref<8x2x32xf32, #tpu.memory_space<vmem>>, vector<1x2x32xf32>
    %278 = vector.shape_cast %277 : vector<1x2x32xf32> to vector<2x32xf32>
    %279 = vector.shape_cast %275 : vector<2x32xf32> to vector<1x2x32xf32>
    tpu.vector_store %arg21[%276, %c0_130, %c0_131], %279 {strides = array<i32>} : memref<8x2x32xf32, #tpu.memory_space<vmem>>, vector<1x2x32xf32>,
    %c7_i32_132 = arith.constant 7 : i32
    %280 = arith.subi %c7_i32_132, %c5_i32 : i32
    %281 = arith.index_cast %280 : i32 to index
    %c0_133 = arith.constant 0 : index
    %c0_134 = arith.constant 0 : index
    %282 = vector.load %arg22[%281, %c0_133, %c0_134] : memref<8x2x32xf32, #tpu.memory_space<vmem>>, vector<1x2x32xf32>
    %283 = vector.shape_cast %282 : vector<1x2x32xf32> to vector<2x32xf32>
    %284 = vector.shape_cast %275 : vector<2x32xf32> to vector<1x2x32xf32>
    tpu.vector_store %arg22[%281, %c0_133, %c0_134], %284 {strides = array<i32>} : memref<8x2x32xf32, #tpu.memory_space<vmem>>, vector<1x2x32xf32>,
    %c6_i32 = arith.constant 6 : i32
    %cst_135 = arith.constant dense<0.000000e+00> : vector<2x32xf32>
    %285 = tpu.matmul %275, %22, %cst_135 {dimension_numbers = #tpu.dot_dimension_numbers<[1], [0], [0], [1], [0, 0, 1, 1], [], []>} : vector<2x32xf32>, vector<32x32xf32>, vector<2x32xf32> -> vector<2x32xf32>
    %cst_136 = arith.constant dense<0.000000e+00> : vector<2x32xf32>
    %286 = tpu.matmul %275, %23, %cst_136 {dimension_numbers = #tpu.dot_dimension_numbers<[1], [0], [0], [1], [0, 0, 1, 1], [], []>} : vector<2x32xf32>, vector<32x32xf32>, vector<2x32xf32> -> vector<2x32xf32>
    %cst_137 = arith.constant dense<0.000000e+00> : vector<2x32xf32>
    %287 = tpu.matmul %275, %24, %cst_137 {dimension_numbers = #tpu.dot_dimension_numbers<[1], [0], [0], [1], [0, 0, 1, 1], [], []>} : vector<2x32xf32>, vector<32x32xf32>, vector<2x32xf32> -> vector<2x32xf32>
    %288 = arith.index_cast %c6_i32 : i32 to index
    %c0_138 = arith.constant 0 : index
    %c0_139 = arith.constant 0 : index
    %289 = vector.load %arg18[%288, %c0_138, %c0_139] : memref<8x2x32xf32, #tpu.memory_space<vmem>>, vector<1x2x32xf32>
    %290 = vector.shape_cast %289 : vector<1x2x32xf32> to vector<2x32xf32>
    %291 = arith.addf %290, %285 : vector<2x32xf32>
    %292 = arith.negf %291 : vector<2x32xf32>
    %293 = math.exp %292 : vector<2x32xf32>
    %cst_140 = arith.constant 1.000000e+00 : f32
    %294 = vector.broadcast %cst_140 : f32 to vector<2x32xf32>
    %295 = arith.addf %294, %293 : vector<2x32xf32>
    %296 = arith.divf %294, %295 : vector<2x32xf32>
    %297 = arith.index_cast %c6_i32 : i32 to index
    %c0_141 = arith.constant 0 : index
    %c0_142 = arith.constant 0 : index
    %298 = vector.load %arg19[%297, %c0_141, %c0_142] : memref<8x2x32xf32, #tpu.memory_space<vmem>>, vector<1x2x32xf32>
    %299 = vector.shape_cast %298 : vector<1x2x32xf32> to vector<2x32xf32>
    %300 = arith.addf %299, %286 : vector<2x32xf32>
    %301 = arith.negf %300 : vector<2x32xf32>
    %302 = math.exp %301 : vector<2x32xf32>
    %cst_143 = arith.constant 1.000000e+00 : f32
    %303 = vector.broadcast %cst_143 : f32 to vector<2x32xf32>
    %304 = arith.addf %303, %302 : vector<2x32xf32>
    %305 = arith.divf %303, %304 : vector<2x32xf32>
    %306 = arith.index_cast %c6_i32 : i32 to index
    %c0_144 = arith.constant 0 : index
    %c0_145 = arith.constant 0 : index
    %307 = vector.load %arg20[%306, %c0_144, %c0_145] : memref<8x2x32xf32, #tpu.memory_space<vmem>>, vector<1x2x32xf32>
    %308 = vector.shape_cast %307 : vector<1x2x32xf32> to vector<2x32xf32>
    %309 = vector.broadcast %25 : vector<1x32xf32> to vector<2x32xf32>
    %310 = arith.addf %287, %309 : vector<2x32xf32>
    %311 = arith.mulf %296, %310 : vector<2x32xf32>
    %312 = arith.addf %308, %311 : vector<2x32xf32>
    %313 = math.tanh %312 : vector<2x32xf32>
    %cst_146 = arith.constant 1.000000e+00 : f32
    %314 = vector.broadcast %cst_146 : f32 to vector<2x32xf32>
    %315 = arith.subf %314, %305 : vector<2x32xf32>
    %316 = arith.mulf %315, %313 : vector<2x32xf32>
    %317 = arith.mulf %305, %275 : vector<2x32xf32>
    %318 = arith.addf %316, %317 : vector<2x32xf32>
    %319 = arith.index_cast %c6_i32 : i32 to index
    %c0_147 = arith.constant 0 : index
    %c0_148 = arith.constant 0 : index
    %320 = vector.load %arg21[%319, %c0_147, %c0_148] : memref<8x2x32xf32, #tpu.memory_space<vmem>>, vector<1x2x32xf32>
    %321 = vector.shape_cast %320 : vector<1x2x32xf32> to vector<2x32xf32>
    %322 = vector.shape_cast %318 : vector<2x32xf32> to vector<1x2x32xf32>
    tpu.vector_store %arg21[%319, %c0_147, %c0_148], %322 {strides = array<i32>} : memref<8x2x32xf32, #tpu.memory_space<vmem>>, vector<1x2x32xf32>,
    %c7_i32_149 = arith.constant 7 : i32
    %323 = arith.subi %c7_i32_149, %c6_i32 : i32
    %324 = arith.index_cast %323 : i32 to index
    %c0_150 = arith.constant 0 : index
    %c0_151 = arith.constant 0 : index
    %325 = vector.load %arg22[%324, %c0_150, %c0_151] : memref<8x2x32xf32, #tpu.memory_space<vmem>>, vector<1x2x32xf32>
    %326 = vector.shape_cast %325 : vector<1x2x32xf32> to vector<2x32xf32>
    %327 = vector.shape_cast %318 : vector<2x32xf32> to vector<1x2x32xf32>
    tpu.vector_store %arg22[%324, %c0_150, %c0_151], %327 {strides = array<i32>} : memref<8x2x32xf32, #tpu.memory_space<vmem>>, vector<1x2x32xf32>,
    %c7_i32_152 = arith.constant 7 : i32
    %cst_153 = arith.constant dense<0.000000e+00> : vector<2x32xf32>
    %328 = tpu.matmul %318, %22, %cst_153 {dimension_numbers = #tpu.dot_dimension_numbers<[1], [0], [0], [1], [0, 0, 1, 1], [], []>} : vector<2x32xf32>, vector<32x32xf32>, vector<2x32xf32> -> vector<2x32xf32>
    %cst_154 = arith.constant dense<0.000000e+00> : vector<2x32xf32>
    %329 = tpu.matmul %318, %23, %cst_154 {dimension_numbers = #tpu.dot_dimension_numbers<[1], [0], [0], [1], [0, 0, 1, 1], [], []>} : vector<2x32xf32>, vector<32x32xf32>, vector<2x32xf32> -> vector<2x32xf32>
    %cst_155 = arith.constant dense<0.000000e+00> : vector<2x32xf32>
    %330 = tpu.matmul %318, %24, %cst_155 {dimension_numbers = #tpu.dot_dimension_numbers<[1], [0], [0], [1], [0, 0, 1, 1], [], []>} : vector<2x32xf32>, vector<32x32xf32>, vector<2x32xf32> -> vector<2x32xf32>
    %331 = arith.index_cast %c7_i32_152 : i32 to index
    %c0_156 = arith.constant 0 : index
    %c0_157 = arith.constant 0 : index
    %332 = vector.load %arg18[%331, %c0_156, %c0_157] : memref<8x2x32xf32, #tpu.memory_space<vmem>>, vector<1x2x32xf32>
    %333 = vector.shape_cast %332 : vector<1x2x32xf32> to vector<2x32xf32>
    %334 = arith.addf %333, %328 : vector<2x32xf32>
    %335 = arith.negf %334 : vector<2x32xf32>
    %336 = math.exp %335 : vector<2x32xf32>
    %cst_158 = arith.constant 1.000000e+00 : f32
    %337 = vector.broadcast %cst_158 : f32 to vector<2x32xf32>
    %338 = arith.addf %337, %336 : vector<2x32xf32>
    %339 = arith.divf %337, %338 : vector<2x32xf32>
    %340 = arith.index_cast %c7_i32_152 : i32 to index
    %c0_159 = arith.constant 0 : index
    %c0_160 = arith.constant 0 : index
    %341 = vector.load %arg19[%340, %c0_159, %c0_160] : memref<8x2x32xf32, #tpu.memory_space<vmem>>, vector<1x2x32xf32>
    %342 = vector.shape_cast %341 : vector<1x2x32xf32> to vector<2x32xf32>
    %343 = arith.addf %342, %329 : vector<2x32xf32>
    %344 = arith.negf %343 : vector<2x32xf32>
    %345 = math.exp %344 : vector<2x32xf32>
    %cst_161 = arith.constant 1.000000e+00 : f32
    %346 = vector.broadcast %cst_161 : f32 to vector<2x32xf32>
    %347 = arith.addf %346, %345 : vector<2x32xf32>
    %348 = arith.divf %346, %347 : vector<2x32xf32>
    %349 = arith.index_cast %c7_i32_152 : i32 to index
    %c0_162 = arith.constant 0 : index
    %c0_163 = arith.constant 0 : index
    %350 = vector.load %arg20[%349, %c0_162, %c0_163] : memref<8x2x32xf32, #tpu.memory_space<vmem>>, vector<1x2x32xf32>
    %351 = vector.shape_cast %350 : vector<1x2x32xf32> to vector<2x32xf32>
    %352 = vector.broadcast %25 : vector<1x32xf32> to vector<2x32xf32>
    %353 = arith.addf %330, %352 : vector<2x32xf32>
    %354 = arith.mulf %339, %353 : vector<2x32xf32>
    %355 = arith.addf %351, %354 : vector<2x32xf32>
    %356 = math.tanh %355 : vector<2x32xf32>
    %cst_164 = arith.constant 1.000000e+00 : f32
    %357 = vector.broadcast %cst_164 : f32 to vector<2x32xf32>
    %358 = arith.subf %357, %348 : vector<2x32xf32>
    %359 = arith.mulf %358, %356 : vector<2x32xf32>
    %360 = arith.mulf %348, %318 : vector<2x32xf32>
    %361 = arith.addf %359, %360 : vector<2x32xf32>
    %362 = arith.index_cast %c7_i32_152 : i32 to index
    %c0_165 = arith.constant 0 : index
    %c0_166 = arith.constant 0 : index
    %363 = vector.load %arg21[%362, %c0_165, %c0_166] : memref<8x2x32xf32, #tpu.memory_space<vmem>>, vector<1x2x32xf32>
    %364 = vector.shape_cast %363 : vector<1x2x32xf32> to vector<2x32xf32>
    %365 = vector.shape_cast %361 : vector<2x32xf32> to vector<1x2x32xf32>
    tpu.vector_store %arg21[%362, %c0_165, %c0_166], %365 {strides = array<i32>} : memref<8x2x32xf32, #tpu.memory_space<vmem>>, vector<1x2x32xf32>,
    %c7_i32_167 = arith.constant 7 : i32
    %366 = arith.subi %c7_i32_167, %c7_i32_152 : i32
    %367 = arith.index_cast %366 : i32 to index
    %c0_168 = arith.constant 0 : index
    %c0_169 = arith.constant 0 : index
    %368 = vector.load %arg22[%367, %c0_168, %c0_169] : memref<8x2x32xf32, #tpu.memory_space<vmem>>, vector<1x2x32xf32>
    %369 = vector.shape_cast %368 : vector<1x2x32xf32> to vector<2x32xf32>
    %370 = vector.shape_cast %361 : vector<2x32xf32> to vector<1x2x32xf32>
    tpu.vector_store %arg22[%367, %c0_168, %c0_169], %370 {strides = array<i32>} : memref<8x2x32xf32, #tpu.memory_space<vmem>>, vector<1x2x32xf32>,
    %c8_i32 = arith.constant 8 : i32
    %c0_170 = arith.constant 0 : index
    %c0_171 = arith.constant 0 : index
    %371 = vector.load %arg17[%c0_170, %c0_171] : memref<2x32xf32, #tpu.memory_space<vmem>>, vector<2x32xf32>
    tpu.vector_store %arg17[%c0_170, %c0_171], %361 {strides = array<i32>} : memref<2x32xf32, #tpu.memory_space<vmem>>, vector<2x32xf32>,
    %372 = tpu.iota {dimensions = array<i32: 2>} : vector<8x2x32xi32>
    %c16_i32 = arith.constant 16 : i32
    %373 = vector.broadcast %c16_i32 : i32 to vector<8x2x32xi32>
    %374 = arith.cmpi slt, %372, %373 : vector<8x2x32xi32>
    %c0_172 = arith.constant 0 : index
    %c0_173 = arith.constant 0 : index
    %c0_174 = arith.constant 0 : index
    %375 = vector.load %arg21[%c0_172, %c0_173, %c0_174] : memref<8x2x32xf32, #tpu.memory_space<vmem>>, vector<8x2x32xf32>
    %c0_175 = arith.constant 0 : index
    %c0_176 = arith.constant 0 : index
    %c0_177 = arith.constant 0 : index
    %376 = vector.load %arg22[%c0_175, %c0_176, %c0_177] : memref<8x2x32xf32, #tpu.memory_space<vmem>>, vector<8x2x32xf32>
    %377 = arith.select %374, %375, %376 : vector<8x2x32xi1>, vector<8x2x32xf32>
    %c0_178 = arith.constant 0 : index
    %c0_179 = arith.constant 0 : index
    %378 = vector.load %arg13[%c0_178, %c0_179] : memref<1x32xf32, #tpu.memory_space<vmem>>, vector<1x32xf32>
    %379 = vector.shape_cast %378 : vector<1x32xf32> to vector<1x1x32xf32>
    %380 = vector.broadcast %379 : vector<1x1x32xf32> to vector<8x2x32xf32>
    %381 = arith.mulf %377, %380 : vector<8x2x32xf32>
    %cst_180 = arith.constant dense<0.000000e+00> : vector<8x2xf32>
    %382 = vector.multi_reduction <add>, %381, %cst_180 [2] : vector<8x2x32xf32> to vector<8x2xf32>
    %383 = tpu.iota {dimensions = array<i32: 0>} : vector<8x2xi32>
    %c0_181 = arith.constant 0 : index
    %c0_182 = arith.constant 0 : index
    %384 = vector.load %arg2[%c0_181, %c0_182] : memref<1x2xi32, #tpu.memory_space<vmem>>, vector<1x2xi32>
    %385 = vector.broadcast %384 : vector<1x2xi32> to vector<8x2xi32>
    %386 = arith.cmpi slt, %383, %385 : vector<8x2xi32>
    %cst_183 = arith.constant -1.000000e+30 : f32
    %387 = vector.broadcast %cst_183 : f32 to vector<8x2xf32>
    %388 = arith.select %386, %382, %387 : vector<8x2xi1>, vector<8x2xf32>
    %cst_184 = arith.constant dense<0xFF800000> : vector<2xf32>
    %389 = vector.multi_reduction <maximumf>, %388, %cst_184 [0] : vector<8x2xf32> to vector<2xf32>
    %390 = vector.shape_cast %389 : vector<2xf32> to vector<1x2xf32>
    %391 = vector.broadcast %390 : vector<1x2xf32> to vector<8x2xf32>
    %392 = arith.subf %388, %391 : vector<8x2xf32>
    %393 = math.exp %392 : vector<8x2xf32>
    %cst_185 = arith.constant 0.000000e+00 : f32
    %394 = vector.broadcast %cst_185 : f32 to vector<8x2xf32>
    %395 = arith.select %386, %393, %394 : vector<8x2xi1>, vector<8x2xf32>
    %cst_186 = arith.constant dense<0.000000e+00> : vector<2xf32>
    %396 = vector.multi_reduction <add>, %395, %cst_186 [0] : vector<8x2xf32> to vector<2xf32>
    %397 = vector.shape_cast %396 : vector<2xf32> to vector<1x2xf32>
    %398 = tpu.reciprocal %397 {approx = true} : vector<1x2xf32> -> vector<1x2xf32>
    %399 = vector.broadcast %398 : vector<1x2xf32> to vector<8x2xf32>
    %400 = arith.mulf %395, %399 : vector<8x2xf32>
    %401 = vector.shape_cast %400 : vector<8x2xf32> to vector<8x2x1xf32>
    %402 = vector.broadcast %401 : vector<8x2x1xf32> to vector<8x2x32xf32>
    %403 = arith.mulf %377, %402 : vector<8x2x32xf32>
    %cst_187 = arith.constant dense<0.000000e+00> : vector<2x32xf32>
    %404 = vector.multi_reduction <add>, %403, %cst_187 [0] : vector<8x2x32xf32> to vector<2x32xf32>
    %c0_188 = arith.constant 0 : index
    %c0_189 = arith.constant 0 : index
    %405 = vector.load %arg14[%c0_188, %c0_189] : memref<32x128xf32, #tpu.memory_space<vmem>>, vector<32x128xf32>
    %cst_190 = arith.constant dense<0.000000e+00> : vector<2x128xf32>
    %406 = tpu.matmul %404, %405, %cst_190 {dimension_numbers = #tpu.dot_dimension_numbers<[1], [0], [0], [1], [0, 0, 1, 1], [], []>} : vector<2x32xf32>, vector<32x128xf32>, vector<2x128xf32> -> vector<2x128xf32>
    %c0_191 = arith.constant 0 : index
    %c0_192 = arith.constant 0 : index
    %407 = vector.load %arg15[%c0_191, %c0_192] : memref<1x128xf32, #tpu.memory_space<vmem>>, vector<1x128xf32>
    %408 = vector.broadcast %407 : vector<1x128xf32> to vector<2x128xf32>
    %409 = arith.addf %406, %408 : vector<2x128xf32>
    %c0_193 = arith.constant 0 : index
    %c0_194 = arith.constant 0 : index
    %410 = vector.load %arg16[%c0_193, %c0_194] : memref<2x128xf32, #tpu.memory_space<vmem>>, vector<2x128xf32>
    tpu.vector_store %arg16[%c0_193, %c0_194], %409 {strides = array<i32>} : memref<2x128xf32, #tpu.memory_space<vmem>>, vector<2x128xf32>,
    return
  }
}

</mosaic_0001>

<bundles_post_ra>
// kernel: sentence_level_attention.1
= control target key start
LH: loop header
LB: loop body
LE: loop exit
PB: predicated region body
PF: predicated region fallthrough
CT: control target
= control target key end

     0   :  { %s4267_s0 = inlined_call_operand.vmem [shape: f32[16,64], index: 0, kind: input, shape index: {}]   ;;  %s4268_s1 = inlined_call_operand.vmem [shape: f32[2,32], index: 1, kind: input, shape index: {}]   ;;  %s4269_s2 = inlined_call_operand.vmem [shape: s32[1,2], index: 2, kind: input, shape index: {}]   ;;  %s4270_s3 = inlined_call_operand.vmem [shape: f32[64,32], index: 3, kind: input, shape index: {}]   ;;  %s4271_s4 = inlined_call_operand.vmem [shape: f32[64,32], index: 4, kind: input, shape index: {}]   ;;  %s4272_s5 = inlined_call_operand.vmem [shape: f32[64,32], index: 5, kind: input, shape index: {}]   ;;  %s4273_s6 = inlined_call_operand.vmem [shape: f32[1,32], index: 6, kind: input, shape index: {}]   ;;  %s4274_s7 = inlined_call_operand.vmem [shape: f32[1,32], index: 7, kind: input, shape index: {}]   ;;  %s4275_s8 = inlined_call_operand.vmem [shape: f32[1,32], index: 8, kind: input, shape index: {}]   ;;  %s4276_s9 = inlined_call_operand.vmem [shape: f32[32,32], index: 9, kind: input, shape index: {}]   ;;  %s4277_s10 = inlined_call_operand.vmem [shape: f32[32,32], index: 10, kind: input, shape index: {}]   ;;  %s4278_s11 = inlined_call_operand.vmem [shape: f32[32,32], index: 11, kind: input, shape index: {}]   ;;  %s4279_s12 = inlined_call_operand.vmem [shape: f32[1,32], index: 12, kind: input, shape index: {}]   ;;  %s4280_s13 = inlined_call_operand.vmem [shape: f32[1,32], index: 13, kind: input, shape index: {}]   ;;  %s4281_s14 = inlined_call_operand.vmem [shape: f32[32,128], index: 14, kind: input, shape index: {}]   ;;  %s4282_s15 = inlined_call_operand.vmem [shape: f32[1,128], index: 15, kind: input, shape index: {}]   ;;  %s4283_s16 = inlined_call_operand.hbm [shape: f32[2,128], index: 16, kind: output, shape index: {0}]   ;;  %s4284_s17 = inlined_call_operand.vmem [shape: f32[2,32], index: 17, kind: output, shape index: {1}]  }
   0x1   :  { %4286 = sst [smem:[#allocation10_spill]] %s4267_s0 }
   0x2   :  { %4287 = sst [smem:[#allocation11_spill]] %s4268_s1 }
   0x3   :  { %v58_v0 = vld [vmem:[%s4270_s3] sm:$0xff]  ;;  %v59_v1 = vld [vmem:[%s4270_s3 + $0x8] sm:$0xff]  ;;  %v60_v5 = vld [vmem:[%s4270_s3 + $0x10] sm:$0xff]  ;;  %vm73_vm0 = vcmask 523264   ;;  %s4288_s20 = sld [smem:[#allocation10_spill]] }
   0x4   :  { %v208_v2 = vld [vmem:[%s4271_s4] sm:$0xff]  ;;  %v3335_v3 = vpack.c.bf16 %v59_v1, %v58_v0  ;;  %v209_v4 = vld [vmem:[%s4271_s4 + $0x8] sm:$0xff]  ;;  %v61_v6 = vld [vmem:[%s4270_s3 + $0x18] sm:$0xff] }
   0x5   :  { %v3351_v7 = vpack.c.bf16 %v209_v4, %v208_v2  ;;  %v3339_v8 = vpack.c.bf16 %v61_v6, %v60_v5  ;;  %v210_v9 = vld [vmem:[%s4271_s4 + $0x10] sm:$0xff]  ;;  %v211_v10 = vld [vmem:[%s4271_s4 + $0x18] sm:$0xff]  ;;  %v62_v11 = vld [vmem:[%s4270_s3 + $0x20] sm:$0xff] }
   0x6   :  { %3336 = vmatprep.subr.bf16.mxu0 %v3335_v3  ;;  %v3355_v12 = vpack.c.bf16 %v211_v10, %v210_v9  ;;  %v63_v13 = vld [vmem:[%s4270_s3 + $0x28] sm:$0xff]  ;;  %v212_v14 = vld [vmem:[%s4271_s4 + $0x20] sm:$0xff]  ;;  %v64_v19 = vld [vmem:[%s4270_s3 + $0x30] sm:$0xff] }
   0x7   :  { %v213_v15 = vld [vmem:[%s4271_s4 + $0x28] sm:$0xff]  ;;  %3338 = vmatpush3.bf16.msra.mxu0 %v3335_v3  ;;  %3352 = vmatprep.subr.bf16.mxu1 %v3351_v7  ;;  %v3343_v16 = vpack.c.bf16 %v63_v13, %v62_v11  ;;  %v65_v20 = vld [vmem:[%s4270_s3 + $0x38] sm:$0xff]  ;;  %v214_v21 = vld [vmem:[%s4271_s4 + $0x30] sm:$0xff] }
   0x8   :  { %3354 = vmatpush3.bf16.msra.mxu1 %v3351_v7  ;;  %3340 = vmatprep.subr.bf16.mxu0 %v3339_v8  ;;  %v3359_v18 = vpack.c.bf16 %v213_v15, %v212_v14  ;;  %v215_v22 = vld [vmem:[%s4271_s4 + $0x38] sm:$0xff]  ;;  %v3347_v23 = vpack.c.bf16 %v65_v20, %v64_v19  ;;  %v350_v25 = vld [vmem:[%s4272_s5] sm:$0xff]  ;;  %v351_v26 = vld [vmem:[%s4272_s5 + $0x8] sm:$0xff] }
   0x9   :  { %v56_v17 = vld [vmem:[%s4288_s20] sm:$0xff]  ;;  %3356 = vmatprep.subr.bf16.mxu1 %v3355_v12  ;;  %v3363_v24 = vpack.c.bf16 %v215_v22, %v214_v21  ;;  %v3367_v27 = vpack.c.bf16 %v351_v26, %v350_v25 }
   0xa   :  { %3019 = vmatprep.mubr.msk.f32.mxu0 %vm73_vm0, %v56_v17  ;;  %3038 = vmatprep.mubr.msk.f32.mxu1 %vm73_vm0, %v56_v17 }
   0xb   :  { %3342 = vmatpush3.bf16.msra.mxu0 %v3339_v8 }
   0xc   :  { %3358 = vmatpush3.bf16.msra.mxu1 %v3355_v12  ;;  %3344 = vmatprep.subr.bf16.mxu0 %v3343_v16 }
   0xd   :  { %3360 = vmatprep.subr.bf16.mxu1 %v3359_v18 }
   0xf   :  { %3346 = vmatpush3.bf16.msra.mxu0 %v3343_v16 }
  0x10   :  { %3362 = vmatpush3.bf16.msra.mxu1 %v3359_v18  ;;  %3348 = vmatprep.subr.bf16.mxu0 %v3347_v23 }
  0x11   :  { %23 = vsyncpa [#allocation8], 0  ;;  %3364 = vmatprep.subr.bf16.mxu1 %v3363_v24  ;;  %v492_v28 = vld [vmem:[%s4276_s9] sm:$0xff]  ;;  %v493_v29 = vld [vmem:[%s4276_s9 + $0x8] sm:$0xff]  ;;  %v3646_v35 = vmov 0.0|0.0   ;;  %vm3647_vm1 = vmmov 0   ;;  %v161_v61 = vlaneseq }
  0x12   :  { %v352_v30 = vld [vmem:[%s4272_s5 + $0x10] sm:$0xff]  ;;  %v353_v31 = vld [vmem:[%s4272_s5 + $0x18] sm:$0xff]  ;;  %v57_v32 = vld [vmem:[%s4288_s20 + $0x8] sm:$0xff]  ;;  %v3815_v33 = vpack.c.bf16 %v493_v29, %v492_v28  ;;  %v3648_v41 = vmov 0.0   ;;  %s4289_s27 = sld [smem:[#allocation11_spill]]  ;;  %vm506_vm2 = vcmask 261120  }
  0x13   :  { %3350 = vmatpush3.bf16.msra.mxu0 %v3347_v23  ;;  %v494_v34 = vld [vmem:[%s4276_s9 + $0x10] sm:$0xff]  ;;  %v495_v36 = vld [vmem:[%s4276_s9 + $0x18] sm:$0xff]  ;;  %v3371_v37 = vpack.c.bf16 %v353_v31, %v352_v30  ;;  %v354_v38 = vld [vmem:[%s4272_s5 + $0x20] sm:$0xff]  ;;  %v3649_v59 = vmov 1983009808   ;;  %v3917_v63 = vshrl.u32 %v161_v61, 7 }
  0x14   :  { %3366 = vmatpush3.bf16.msra.mxu1 %v3363_v24  ;;  %3368 = vmatprep.subr.bf16.mxu0 %v3367_v27  ;;  %v355_v39 = vld [vmem:[%s4272_s5 + $0x28] sm:$0xff]  ;;  %v3833_v40 = vpack.c.bf16 %v495_v36, %v494_v34  ;;  %v496_v43 = vld [vmem:[%s4277_s10] sm:$0xff]  ;;  %v356_v45 = vld [vmem:[%s4272_s5 + $0x30] sm:$0xff]  ;;  %v159_v60 = vunpack.c.l.s4 %v3649_v59  ;;  %vm199_vm3 = vcmask 254976   ;;  %vm2575_vm5 = vcmask 1041409   ;;  %s3650_s4 = smov [#allocation7]  }
  0x15   :  { %3383 = vmatprep.subr.bf16.mxu1 %v3646_v35  ;;  %v3375_v42 = vpack.c.bf16 %v355_v39, %v354_v38  ;;  %v497_v44 = vld [vmem:[%s4277_s10 + $0x8] sm:$0xff]  ;;  %v357_v46 = vld [vmem:[%s4272_s5 + $0x38] sm:$0xff]  ;;  %v498_v49 = vld [vmem:[%s4277_s10 + $0x10] sm:$0xff]  ;;  %vm2577_vm6 = vcmask 1042434   ;;  %vm2579_vm7 = vcmask 1043459   ;;  %vm2581_vm8 = vcmask 1044484  }
  0x16   :  { %3020 = vmatmul.mubr.msk.f32.vlgmr.msra.gmra.mrb[0].mxu0 %vm73_vm0, %v57_v32  ;;  %v3857_v48 = vpack.c.bf16 %v497_v44, %v496_v43  ;;  %v499_v50 = vld [vmem:[%s4277_s10 + $0x18] sm:$0xff]  ;;  %v3379_v51 = vpack.c.bf16 %v357_v46, %v356_v45  ;;  %v500_v53 = vld [vmem:[%s4278_s11] sm:$0xff]  ;;  %v501_v54 = vld [vmem:[%s4278_s11 + $0x8] sm:$0xff]  ;;  %v160_v62 = vunpack.c.0.s8 %v159_v60  ;;  %vm2583_vm9 = vcmask 1045509   ;;  %s2782_s10 = sshll.u32 %s3650_s4, 4  ;;  %s2783_s10 = int_to_ptr.vmem [resolvable:$true] %s2782_s10 }
  0x17   :  { %3039 = vmatmul.mubr.msk.f32.vlgmr.msra.gmra.mrb[0].mxu1 %vm73_vm0, %v57_v32  ;;  %3370 = vmatpush3.bf16.msra.mxu0 %v3367_v27  ;;  %v3869_v52 = vpack.c.bf16 %v499_v50, %v498_v49  ;;  %v3880_v55 = vpack.c.bf16 %v501_v54, %v500_v53  ;;  %v502_v56 = vld [vmem:[%s4278_s11 + $0x10] sm:$0xff]  ;;  %v503_v57 = vld [vmem:[%s4278_s11 + $0x18] sm:$0xff]  ;;  %v2794_v0 = vld [vmem:[%s4273_s6] ss:$0 sm:$0xff]  ;;  %vm2585_vm10 = vcmask 1046534   ;;  %vm2587_vm11 = vcmask 1047559   ;;  %p3627_p1 = scmp.lt.s32.totalorder %s2783_s10, %s2783_s10 }
  0x18   :  { %3385 = vmatpush3.bf16.msra.mxu1 %v3815_v33  ;;  %3068 = vmatprep.mubr.msk.f32.mxu1 %vm3647_vm1, %v3648_v41  ;;  %v3855_v47 = vld [vmem:[%s4289_s27] sm:$0x3]  ;;  %v3895_v58 = vpack.c.bf16 %v503_v57, %v502_v56  ;;  %v3923_v1 = vsub.s32 %v160_v62, %v3917_v63  ;;  %vm2591_vm13 = vcmask 15360   ;;  %s3622_s9 = scalar_lea.vmem %s2783_s10, 32 }
  0x19   :  { %3386 = vmatprep.subr.bf16.mxu1 %v3646_v35  ;;  %3372 = vmatprep.subr.bf16.mxu0 %v3371_v37  ;;  %v2797_v2 = vld [vmem:[%s4274_s7] ss:$0 sm:$0xff]  ;;  %p3623_p0 = scmp.ne.s32.totalorder %s2783_s10, %s3622_s9  ;;  %p3628_p2 = scmp.lt.s32.totalorder %s3622_s9, %s3622_s9 }
  0x1a   :  { %3057 = vmatprep.mubr.msk.f32.mxu0 %vm73_vm0, %v56_v17 }
  0x1b   :  { %3374 = vmatpush3.bf16.msra.mxu0 %v3371_v37  ;;  %v2800_v37 = vld [vmem:[%s4275_s8] ss:$0 sm:$0xff]  ;;  %p3629_p3 = por %p3628_p2, %p3627_p1 }
  0x1c   :  { %3388 = vmatpush3.bf16.msra.mxu1 %v3833_v40  ;;  %3376 = vmatprep.subr.bf16.mxu0 %v3375_v42 }
  0x1d   :  { %3389 = vmatprep.subr.bf16.mxu1 %v3646_v35  ;;  %p3630_p4 = pnand %p3629_p3, %p3623_p0 }
  0x1f   :  { %3069 = vmatmul.mubr.msk.f32.vlgmr.msra.gmra.mrb[2].mxu1 %vm506_vm2, %v3855_v47  ;;  %3378 = vmatpush3.bf16.msra.mxu0 %v3375_v42 }
  0x20   :  { %3391 = vmatpush3.bf16.msra.mxu1 %v3857_v48  ;;  %3079 = vmatprep.mubr.msk.f32.mxu1 %vm3647_vm1, %v3648_v41 }
  0x21   :  { %3392 = vmatprep.subr.bf16.mxu1 %v3646_v35  ;;  %3380 = vmatprep.subr.bf16.mxu0 %v3379_v51 }
  0x23   :  { %3382 = vmatpush3.bf16.msra.mxu0 %v3379_v51 }
  0x24   :  { %3394 = vmatpush3.bf16.msra.mxu1 %v3869_v52  ;;  %3395 = vmatprep.subr.bf16.mxu0 %v3646_v35 }
  0x25   :  { %3401 = vmatprep.subr.bf16.mxu1 %v3646_v35 }
  0x26   :  { %3058 = vmatmul.mubr.msk.f32.vlgmr.msra.gmra.mrb[2].mxu0 %vm73_vm0, %v57_v32 }
  0x27   :  { %3080 = vmatmul.mubr.msk.f32.vlgmr.msra.gmra.mrb[4].mxu1 %vm506_vm2, %v3855_v47  ;;  %3397 = vmatpush3.bf16.msra.mxu0 %v3880_v55 }
  0x28   :  { %3398 = vmatprep.subr.bf16.mxu0 %v3646_v35  ;;  %3090 = vmatprep.mubr.msk.f32.mxu0 %vm3647_vm1, %v3648_v41 }
  0x29   :  { %3403 = vmatpush3.bf16.msra.mxu1 %v3815_v33  ;;  %3101 = vmatprep.mubr.msk.f32.mxu1 %vm3647_vm1, %v3648_v41 }
  0x2a   :  { %3404 = vmatprep.subr.bf16.mxu1 %v3646_v35 }
  0x2b   :  { %3400 = vmatpush3.bf16.msra.mxu0 %v3895_v58 }
  0x2c   :  { %3407 = vmatprep.subr.bf16.mxu0 %v3646_v35 }
  0x2d   :  { %3406 = vmatpush3.bf16.msra.mxu1 %v3833_v40 }
  0x2e   :  { %3091 = vmatmul.mubr.msk.f32.vlgmr.msra.gmra.mrb[4].mxu0 %vm506_vm2, %v3855_v47  ;;  %3413 = vmatprep.subr.bf16.mxu1 %v3646_v35 }
  0x2f   :  { %3409 = vmatpush3.bf16.msra.mxu0 %v3857_v48  ;;  %3112 = vmatprep.mubr.msk.f32.mxu0 %vm3647_vm1, %v3648_v41 }
  0x30   :  { %3410 = vmatprep.subr.bf16.mxu0 %v3646_v35 }
  0x33   :  { %3412 = vmatpush3.bf16.msra.mxu0 %v3869_v52 }
  0x34   :  { %3419 = vmatprep.subr.bf16.mxu0 %v3646_v35 }
  0xe9   :  { %v3021_v3 = vpop.f32.mrb[0].mxu0 }
  0xea   :  { %v152_v4 = vadd.f32 %v3021_v3, %v2794_v0  ;;  %v146_v5 = vpop.f32.mrb[1].mxu0  ;;  %v3040_v6 = vpop.f32.mrb[0].mxu1 }
  0xeb   :  { %v147_v7 = vadd.f32 %v2794_v0, %v146_v5  ;;  %v295_v8 = vadd.f32 %v3040_v6, %v2797_v2  ;;  %v289_v9 = vpop.f32.mrb[1].mxu1 }
  0xec   :  { %v174_v10 = vcombine.high %v152_v4, %v152_v4  ;;  %v181_v11 = vrot.slane %v152_v4, %v3923_v1  ;;  %v290_v12 = vadd.f32 %v2797_v2, %v289_v9 }
  0xed   :  { %v157_v13 = vcombine.high %v147_v7, %v147_v7  ;;  %v164_v14 = vrot.slane %v147_v7, %v3923_v1  ;;  %v317_v15 = vcombine.high %v295_v8, %v295_v8  ;;  %v324_v16 = vrot.slane %v295_v8, %v3923_v1  ;;  %v3970_v8 = vld [vmem:[%s4279_s12] ss:$0 sm:$0xff] }
  0xee   :  { %v188_v17 = vrot.slane %v174_v10, %v3923_v1  ;;  %v189_v18 = vcombine.high %v181_v11, %v181_v11  ;;  %204 = vst.msk [vmem:[#allocation2 + $0x8] sm:$0x3] %vm199_vm3, %v181_v11  ;;  %v300_v19 = vcombine.high %v290_v12, %v290_v12  ;;  %v307_v20 = vrot.slane %v290_v12, %v3923_v1 }
  0xef   :  { %v171_v21 = vrot.slane %v157_v13, %v3923_v1  ;;  %v172_v22 = vcombine.high %v164_v14, %v164_v14  ;;  %200 = vst.msk [vmem:[#allocation2] sm:$0x3] %vm199_vm3, %v164_v14  ;;  %v331_v23 = vrot.slane %v317_v15, %v3923_v1  ;;  %v332_v24 = vcombine.high %v324_v16, %v324_v16 }
  0xf0   :  { %346 = vst.msk [vmem:[#allocation3 + $0x8] sm:$0x3] %vm199_vm3, %v324_v16  ;;  %v190_v25 = vcombine.high %v188_v17, %v188_v17  ;;  %205 = vst.msk [vmem:[#allocation2 + $0xa] sm:$0x3] %vm199_vm3, %v189_v18  ;;  %v314_v26 = vrot.slane %v300_v19, %v3923_v1  ;;  %v315_v27 = vcombine.high %v307_v20, %v307_v20 }
  0xf1   :  { %206 = vst.msk [vmem:[#allocation2 + $0xc] sm:$0x3] %vm199_vm3, %v188_v17  ;;  %342 = vst.msk [vmem:[#allocation3] sm:$0x3] %vm199_vm3, %v307_v20  ;;  %v173_v28 = vcombine.high %v171_v21, %v171_v21  ;;  %v333_v29 = vcombine.high %v331_v23, %v331_v23 }
  0xf2   :  { %201 = vst.msk [vmem:[#allocation2 + $0x2] sm:$0x3] %vm199_vm3, %v172_v22  ;;  %202 = vst.msk [vmem:[#allocation2 + $0x4] sm:$0x3] %vm199_vm3, %v171_v21  ;;  %v316_v30 = vcombine.high %v314_v26, %v314_v26  ;;  %v576_v31 = vpop.f32.mrb[2].mxu1 }
  0xf3   :  { %347 = vst.msk [vmem:[#allocation3 + $0xa] sm:$0x3] %vm199_vm3, %v332_v24  ;;  %348 = vst.msk [vmem:[#allocation3 + $0xc] sm:$0x3] %vm199_vm3, %v331_v23  ;;  %v3070_v32 = vpop.f32.mrb[3].mxu1 }
  0xf4   :  { %207 = vst.msk [vmem:[#allocation2 + $0xe] sm:$0x3] %vm199_vm3, %v190_v25  ;;  %343 = vst.msk [vmem:[#allocation3 + $0x2] sm:$0x3] %vm199_vm3, %v315_v27 }
  0xf5   :  { %344 = vst.msk [vmem:[#allocation3 + $0x4] sm:$0x3] %vm199_vm3, %v314_v26  ;;  %203 = vst.msk [vmem:[#allocation2 + $0x6] sm:$0x3] %vm199_vm3, %v173_v28 }
  0xf6   :  { %349 = vst.msk [vmem:[#allocation3 + $0xe] sm:$0x3] %vm199_vm3, %v333_v29  ;;  %345 = vst.msk [vmem:[#allocation3 + $0x6] sm:$0x3] %vm199_vm3, %v316_v30  ;;  %v650_v34 = vld [vmem:[#allocation2] sm:$0x3] }
  0xf7   :  { %v651_v36 = vadd.f32 %v650_v34, %v576_v31 }
  0xf8   :  { %v658_v38 = vld [vmem:[#allocation3] sm:$0x3] }
  0xf9   :  { %v2805_v39 = vmul.f32 -1.442695, %v651_v36  ;;  %v3059_v42 = vpop.f32.mrb[2].mxu0  ;;  %v897_v21 = vld [vmem:[#allocation2 + $0x2] sm:$0x3] }
  0xfa   :  { %v646_v43 = vpop.f32.mrb[4].mxu1  ;;  %v437_v44 = vadd.f32 %v3059_v42, %v2800_v37  ;;  %v431_v45 = vpop.f32.mrb[3].mxu0 }
  0xfb   :  { %3538 = vpow2.f32 %v2805_v39  ;;  %v659_v46 = vadd.f32 %v658_v38, %v646_v43  ;;  %v3081_v49 = vpop.f32.mrb[5].mxu1  ;;  %v432_v50 = vadd.f32 %v2800_v37, %v431_v45  ;;  %v906_v27 = vld [vmem:[#allocation3 + $0x2] sm:$0x3] }
  0xfc   :  { %v459_v51 = vcombine.high %v437_v44, %v437_v44  ;;  %v466_v53 = vrot.slane %v437_v44, %v3923_v1 }
  0xfd   :  { %v442_v54 = vcombine.high %v432_v50, %v432_v50  ;;  %v449_v56 = vrot.slane %v432_v50, %v3923_v1  ;;  %v2806_v57 = vmul.f32 -1.442695, %v659_v46 }
  0xfe   :  { %v473_v59 = vrot.slane %v459_v51, %v3923_v1  ;;  %v474_v60 = vcombine.high %v466_v53, %v466_v53  ;;  %488 = vst.msk [vmem:[#allocation4 + $0x8] sm:$0x3] %vm199_vm3, %v466_v53 }
  0xff   :  { %v456_v62 = vrot.slane %v442_v54, %v3923_v1  ;;  %v457_v0 = vcombine.high %v449_v56, %v449_v56  ;;  %484 = vst.msk [vmem:[#allocation4] sm:$0x3] %vm199_vm3, %v449_v56  ;;  %3540 = vpow2.f32 %v2806_v57  ;;  %v1141_v56 = vld [vmem:[#allocation2 + $0x4] sm:$0x3] }
 0x100   :  { %v475_v2 = vcombine.high %v473_v59, %v473_v59  ;;  %489 = vst.msk [vmem:[#allocation4 + $0xa] sm:$0x3] %vm199_vm3, %v474_v60  ;;  %490 = vst.msk [vmem:[#allocation4 + $0xc] sm:$0x3] %vm199_vm3, %v473_v59 }
 0x101   :  { %v458_v3 = vcombine.high %v456_v62, %v456_v62  ;;  %485 = vst.msk [vmem:[#allocation4 + $0x2] sm:$0x3] %vm199_vm3, %v457_v0  ;;  %486 = vst.msk [vmem:[#allocation4 + $0x4] sm:$0x3] %vm199_vm3, %v456_v62  ;;  %v739_v4 = vpop.f32.mrb[4].mxu0 }
 0x102   :  { %491 = vst.msk [vmem:[#allocation4 + $0xe] sm:$0x3] %vm199_vm3, %v475_v2  ;;  %v3092_v5 = vpop.f32.mrb[5].mxu0  ;;  %v740_v10 = vadd.f32 %v3970_v8, %v739_v4  ;;  %v1150_v2 = vld [vmem:[#allocation3 + $0x4] sm:$0x3] }
 0x103   :  { %487 = vst.msk [vmem:[#allocation4 + $0x6] sm:$0x3] %vm199_vm3, %v458_v3 }
 0x105   :  { %v3539_v1 = vpop.eup %3538 }
 0x106   :  { %v655_v6 = vadd.f32 1.0, %v3539_v1  ;;  %v666_v12 = vld [vmem:[#allocation4] sm:$0x3] }
 0x108   :  { %3542 = vrcp.f32 %v655_v6  ;;  %v915_v43 = vld [vmem:[#allocation4 + $0x2] sm:$0x3] }
 0x109   :  { %v3541_v7 = vpop.eup %3540 }
 0x10a   :  { %v663_v9 = vadd.f32 1.0, %v3541_v7 }
 0x10c   :  { %3544 = vrcp.f32 %v663_v9 }
 0x112   :  { %v3543_v11 = vpop.eup %3542 }
 0x113   :  { %v743_v13 = vmul.f32 %v3543_v11, %v740_v10 }
 0x115   :  { %v744_v14 = vadd.f32 %v743_v13, %v666_v12 }
 0x116   :  { %v3545_v15 = vpop.eup %3544 }
 0x117   :  { %3546 = vtanh.f32 %v744_v14  ;;  %v746_v16 = vsub.f32 1.0, %v3545_v15  ;;  %v748_v18 = vmul.f32 %v3545_v15, %v3855_v47  ;;  %v1159_v14 = vld [vmem:[#allocation4 + $0x4] sm:$0x3] }
 0x121   :  { %v3547_v17 = vpop.eup %3546 }
 0x122   :  { %v747_v19 = vmul.f32 %v3547_v17, %v746_v16 }
 0x124   :  { %v749_v20 = vadd.f32 %v748_v18, %v747_v19 }
 0x126   :  { %750 = vst.msk [vmem:[#allocation5] sm:$0x3] %vm199_vm3, %v749_v20  ;;  %752 = vst.msk [vmem:[#allocation6 + $0xe] sm:$0x3] %vm199_vm3, %v749_v20  ;;  %3102 = vmatmul.mubr.msk.f32.vlgmr.msra.gmra.mrb[6].mxu1 %vm506_vm2, %v749_v20  ;;  %3113 = vmatmul.mubr.msk.f32.vlgmr.msra.gmra.mrb[6].mxu0 %vm506_vm2, %v749_v20 }
 0x127   :  { %3415 = vmatpush3.bf16.msra.mxu1 %v3880_v55  ;;  %3123 = vmatprep.mubr.msk.f32.mxu1 %vm3647_vm1, %v3648_v41 }
 0x128   :  { %3416 = vmatprep.subr.bf16.mxu1 %v3646_v35  ;;  %3421 = vmatpush3.bf16.msra.mxu0 %v3815_v33 }
 0x129   :  { %3422 = vmatprep.subr.bf16.mxu0 %v3646_v35  ;;  %3134 = vmatprep.mubr.msk.f32.mxu0 %vm3647_vm1, %v3648_v41 }
 0x12b   :  { %3418 = vmatpush3.bf16.msra.mxu1 %v3895_v58 }
 0x12c   :  { %3425 = vmatprep.subr.bf16.mxu1 %v3646_v35  ;;  %3424 = vmatpush3.bf16.msra.mxu0 %v3833_v40 }
 0x12d   :  { %3431 = vmatprep.subr.bf16.mxu0 %v3646_v35 }
 0x12e   :  { %3124 = vmatmul.mubr.msk.f32.vlgmr.msra.gmra.mrb[8].mxu1 %vm506_vm2, %v749_v20 }
 0x12f   :  { %3427 = vmatpush3.bf16.msra.mxu1 %v3857_v48  ;;  %3145 = vmatprep.mubr.msk.f32.mxu1 %vm3647_vm1, %v3648_v41 }
 0x130   :  { %3428 = vmatprep.subr.bf16.mxu1 %v3646_v35 }
 0x133   :  { %3430 = vmatpush3.bf16.msra.mxu1 %v3869_v52 }
 0x134   :  { %3437 = vmatprep.subr.bf16.mxu1 %v3646_v35 }
 0x1f9   :  { %v822_v47 = vpop.f32.mrb[6].mxu1  ;;  %v892_v22 = vpop.f32.mrb[6].mxu0 }
 0x1fa   :  { %v898_v23 = vadd.f32 %v897_v21, %v822_v47  ;;  %v3103_v24 = vpop.f32.mrb[7].mxu1  ;;  %v3114_v25 = vpop.f32.mrb[7].mxu0  ;;  %v907_v28 = vadd.f32 %v906_v27, %v892_v22  ;;  %v1385_v22 = vld [vmem:[#allocation2 + $0x6] sm:$0x3] }
 0x1fc   :  { %v2811_v26 = vmul.f32 -1.442695, %v898_v23  ;;  %v2812_v29 = vmul.f32 -1.442695, %v907_v28  ;;  %v1394_v28 = vld [vmem:[#allocation3 + $0x6] sm:$0x3] }
 0x1fe   :  { %3548 = vpow2.f32 %v2811_v26 }
 0x1ff   :  { %3550 = vpow2.f32 %v2812_v29 }
 0x201   :  { %v982_v30 = vpop.f32.mrb[8].mxu1 }
 0x202   :  { %v3125_v31 = vpop.f32.mrb[9].mxu1  ;;  %v983_v38 = vadd.f32 %v3970_v8, %v982_v30 }
 0x208   :  { %v3549_v32 = vpop.eup %3548 }
 0x209   :  { %v902_v34 = vadd.f32 1.0, %v3549_v32  ;;  %v3551_v36 = vpop.eup %3550 }
 0x20a   :  { %v911_v37 = vadd.f32 1.0, %v3551_v36 }
 0x20b   :  { %3552 = vrcp.f32 %v902_v34 }
 0x20c   :  { %3554 = vrcp.f32 %v911_v37 }
 0x215   :  { %v3553_v39 = vpop.eup %3552 }
 0x216   :  { %v986_v42 = vmul.f32 %v3553_v39, %v983_v38  ;;  %v3555_v45 = vpop.eup %3554 }
 0x217   :  { %v989_v46 = vsub.f32 1.0, %v3555_v45  ;;  %v991_v50 = vmul.f32 %v3555_v45, %v749_v20 }
 0x218   :  { %v987_v44 = vadd.f32 %v986_v42, %v915_v43 }
 0x21a   :  { %3556 = vtanh.f32 %v987_v44  ;;  %v1403_v44 = vld [vmem:[#allocation4 + $0x6] sm:$0x3] }
 0x224   :  { %v3557_v49 = vpop.eup %3556 }
 0x225   :  { %v990_v51 = vmul.f32 %v3557_v49, %v989_v46 }
 0x227   :  { %v992_v53 = vadd.f32 %v991_v50, %v990_v51 }
 0x229   :  { %994 = vst.msk [vmem:[#allocation5 + $0x2] sm:$0x3] %vm199_vm3, %v992_v53  ;;  %996 = vst.msk [vmem:[#allocation6 + $0xc] sm:$0x3] %vm199_vm3, %v992_v53  ;;  %3135 = vmatmul.mubr.msk.f32.vlgmr.msra.gmra.mrb[8].mxu0 %vm506_vm2, %v992_v53  ;;  %3146 = vmatmul.mubr.msk.f32.vlgmr.msra.gmra.mrb[10].mxu1 %vm506_vm2, %v992_v53 }
 0x22a   :  { %3433 = vmatpush3.bf16.msra.mxu0 %v3880_v55  ;;  %3156 = vmatprep.mubr.msk.f32.mxu0 %vm3647_vm1, %v3648_v41 }
 0x22b   :  { %3434 = vmatprep.subr.bf16.mxu0 %v3646_v35  ;;  %3439 = vmatpush3.bf16.msra.mxu1 %v3815_v33 }
 0x22c   :  { %3440 = vmatprep.subr.bf16.mxu1 %v3646_v35  ;;  %3167 = vmatprep.mubr.msk.f32.mxu1 %vm3647_vm1, %v3648_v41 }
 0x22e   :  { %3436 = vmatpush3.bf16.msra.mxu0 %v3895_v58 }
 0x22f   :  { %3443 = vmatprep.subr.bf16.mxu0 %v3646_v35  ;;  %3442 = vmatpush3.bf16.msra.mxu1 %v3833_v40 }
 0x230   :  { %3449 = vmatprep.subr.bf16.mxu1 %v3646_v35 }
 0x231   :  { %3157 = vmatmul.mubr.msk.f32.vlgmr.msra.gmra.mrb[10].mxu0 %vm506_vm2, %v992_v53 }
 0x232   :  { %3445 = vmatpush3.bf16.msra.mxu0 %v3857_v48  ;;  %3178 = vmatprep.mubr.msk.f32.mxu0 %vm3647_vm1, %v3648_v41 }
 0x233   :  { %3446 = vmatprep.subr.bf16.mxu0 %v3646_v35 }
 0x236   :  { %3448 = vmatpush3.bf16.msra.mxu0 %v3869_v52 }
 0x237   :  { %3455 = vmatprep.subr.bf16.mxu0 %v3646_v35 }
 0x2fc   :  { %v1066_v54 = vpop.f32.mrb[8].mxu0  ;;  %v1136_v57 = vpop.f32.mrb[10].mxu1 }
 0x2fd   :  { %v1142_v59 = vadd.f32 %v1141_v56, %v1066_v54  ;;  %v3136_v60 = vpop.f32.mrb[9].mxu0  ;;  %v3147_v62 = vpop.f32.mrb[11].mxu1  ;;  %v1151_v3 = vadd.f32 %v1150_v2, %v1136_v57  ;;  %v1629_v57 = vld [vmem:[#allocation2 + $0x8] sm:$0x3] }
 0x2ff   :  { %v2816_v0 = vmul.f32 -1.442695, %v1142_v59  ;;  %v2817_v4 = vmul.f32 -1.442695, %v1151_v3  ;;  %v1638_v3 = vld [vmem:[#allocation3 + $0x8] sm:$0x3] }
 0x301   :  { %3558 = vpow2.f32 %v2816_v0 }
 0x302   :  { %3560 = vpow2.f32 %v2817_v4 }
 0x304   :  { %v1226_v5 = vpop.f32.mrb[10].mxu0 }
 0x305   :  { %v3158_v1 = vpop.f32.mrb[11].mxu0  ;;  %v1227_v11 = vadd.f32 %v3970_v8, %v1226_v5 }
 0x30b   :  { %v3559_v6 = vpop.eup %3558 }
 0x30c   :  { %v1146_v7 = vadd.f32 1.0, %v3559_v6  ;;  %v3561_v9 = vpop.eup %3560 }
 0x30d   :  { %v1155_v10 = vadd.f32 1.0, %v3561_v9 }
 0x30e   :  { %3562 = vrcp.f32 %v1146_v7 }
 0x30f   :  { %3564 = vrcp.f32 %v1155_v10 }
 0x318   :  { %v3563_v12 = vpop.eup %3562 }
 0x319   :  { %v1230_v13 = vmul.f32 %v3563_v12, %v1227_v11  ;;  %v3565_v16 = vpop.eup %3564 }
 0x31a   :  { %v1233_v17 = vsub.f32 1.0, %v3565_v16  ;;  %v1235_v19 = vmul.f32 %v3565_v16, %v992_v53 }
 0x31b   :  { %v1231_v15 = vadd.f32 %v1230_v13, %v1159_v14 }
 0x31d   :  { %3566 = vtanh.f32 %v1231_v15  ;;  %v1647_v15 = vld [vmem:[#allocation4 + $0x8] sm:$0x3] }
 0x327   :  { %v3567_v18 = vpop.eup %3566 }
 0x328   :  { %v1234_v20 = vmul.f32 %v3567_v18, %v1233_v17 }
 0x32a   :  { %v1236_v47 = vadd.f32 %v1235_v19, %v1234_v20 }
 0x32c   :  { %1238 = vst.msk [vmem:[#allocation5 + $0x4] sm:$0x3] %vm199_vm3, %v1236_v47  ;;  %1240 = vst.msk [vmem:[#allocation6 + $0xa] sm:$0x3] %vm199_vm3, %v1236_v47  ;;  %3168 = vmatmul.mubr.msk.f32.vlgmr.msra.gmra.mrb[12].mxu1 %vm506_vm2, %v1236_v47  ;;  %3179 = vmatmul.mubr.msk.f32.vlgmr.msra.gmra.mrb[12].mxu0 %vm506_vm2, %v1236_v47 }
 0x32d   :  { %3451 = vmatpush3.bf16.msra.mxu1 %v3880_v55  ;;  %3189 = vmatprep.mubr.msk.f32.mxu1 %vm3647_vm1, %v3648_v41 }
 0x32e   :  { %3452 = vmatprep.subr.bf16.mxu1 %v3646_v35  ;;  %3457 = vmatpush3.bf16.msra.mxu0 %v3815_v33 }
 0x32f   :  { %3458 = vmatprep.subr.bf16.mxu0 %v3646_v35  ;;  %3200 = vmatprep.mubr.msk.f32.mxu0 %vm3647_vm1, %v3648_v41 }
 0x331   :  { %3454 = vmatpush3.bf16.msra.mxu1 %v3895_v58 }
 0x332   :  { %3461 = vmatprep.subr.bf16.mxu1 %v3646_v35  ;;  %3460 = vmatpush3.bf16.msra.mxu0 %v3833_v40 }
 0x333   :  { %3467 = vmatprep.subr.bf16.mxu0 %v3646_v35 }
 0x334   :  { %3190 = vmatmul.mubr.msk.f32.vlgmr.msra.gmra.mrb[14].mxu1 %vm506_vm2, %v1236_v47 }
 0x335   :  { %3463 = vmatpush3.bf16.msra.mxu1 %v3857_v48  ;;  %3211 = vmatprep.mubr.msk.f32.mxu1 %vm3647_vm1, %v3648_v41 }
 0x336   :  { %3464 = vmatprep.subr.bf16.mxu1 %v3646_v35 }
 0x339   :  { %3466 = vmatpush3.bf16.msra.mxu1 %v3869_v52 }
 0x33a   :  { %3473 = vmatprep.subr.bf16.mxu1 %v3646_v35 }
 0x3ff   :  { %v1310_v21 = vpop.f32.mrb[12].mxu1  ;;  %v1380_v23 = vpop.f32.mrb[12].mxu0 }
 0x400   :  { %v1386_v24 = vadd.f32 %v1385_v22, %v1310_v21  ;;  %v3169_v25 = vpop.f32.mrb[13].mxu1  ;;  %v3180_v26 = vpop.f32.mrb[13].mxu0  ;;  %v1395_v29 = vadd.f32 %v1394_v28, %v1380_v23  ;;  %v4078_v22 = vand.u32 127, %v161_v61  ;;  %v4090_v23 = vld [vmem:[%s4280_s13] ss:$0 sm:$0xff] }
 0x402   :  { %v2821_v27 = vmul.f32 -1.442695, %v1386_v24  ;;  %v2822_v30 = vmul.f32 -1.442695, %v1395_v29  ;;  %vm2463_vm4 = vcmp.lt.s32.totalorder %v4078_v22, 16 }
 0x403   :  { %v1873_v29 = vld [vmem:[#allocation2 + $0xa] sm:$0x3] }
 0x404   :  { %3568 = vpow2.f32 %v2821_v27 }
 0x405   :  { %3570 = vpow2.f32 %v2822_v30 }
 0x407   :  { %v1470_v31 = vpop.f32.mrb[14].mxu1 }
 0x408   :  { %v3191_v32 = vpop.f32.mrb[15].mxu1  ;;  %v1471_v39 = vadd.f32 %v3970_v8, %v1470_v31 }
 0x40e   :  { %v3569_v34 = vpop.eup %3568 }
 0x40f   :  { %v1390_v36 = vadd.f32 1.0, %v3569_v34  ;;  %v3571_v37 = vpop.eup %3570 }
 0x410   :  { %v1399_v38 = vadd.f32 1.0, %v3571_v37  ;;  %v1882_v37 = vld [vmem:[#allocation3 + $0xa] sm:$0x3] }
 0x411   :  { %3572 = vrcp.f32 %v1390_v36 }
 0x412   :  { %3574 = vrcp.f32 %v1399_v38 }
 0x41b   :  { %v3573_v42 = vpop.eup %3572 }
 0x41c   :  { %v1474_v43 = vmul.f32 %v3573_v42, %v1471_v39  ;;  %v3575_v46 = vpop.eup %3574 }
 0x41d   :  { %v1477_v49 = vsub.f32 1.0, %v3575_v46  ;;  %v1479_v51 = vmul.f32 %v3575_v46, %v1236_v47 }
 0x41e   :  { %v1475_v45 = vadd.f32 %v1474_v43, %v1403_v44 }
 0x420   :  { %3576 = vtanh.f32 %v1475_v45 }
 0x42a   :  { %v3577_v50 = vpop.eup %3576 }
 0x42b   :  { %v1478_v53 = vmul.f32 %v3577_v50, %v1477_v49 }
 0x42d   :  { %v1480_v54 = vadd.f32 %v1479_v51, %v1478_v53 }
 0x42f   :  { %1482 = vst.msk [vmem:[#allocation5 + $0x6] sm:$0x3] %vm199_vm3, %v1480_v54  ;;  %1484 = vst.msk [vmem:[#allocation6 + $0x8] sm:$0x3] %vm199_vm3, %v1480_v54  ;;  %3201 = vmatmul.mubr.msk.f32.vlgmr.msra.gmra.mrb[14].mxu0 %vm506_vm2, %v1480_v54  ;;  %3212 = vmatmul.mubr.msk.f32.vlgmr.msra.gmra.mrb[16].mxu1 %vm506_vm2, %v1480_v54 }
 0x430   :  { %3469 = vmatpush3.bf16.msra.mxu0 %v3880_v55  ;;  %3222 = vmatprep.mubr.msk.f32.mxu0 %vm3647_vm1, %v3648_v41 }
 0x431   :  { %3470 = vmatprep.subr.bf16.mxu0 %v3646_v35  ;;  %3475 = vmatpush3.bf16.msra.mxu1 %v3815_v33 }
 0x432   :  { %3476 = vmatprep.subr.bf16.mxu1 %v3646_v35  ;;  %3233 = vmatprep.mubr.msk.f32.mxu1 %vm3647_vm1, %v3648_v41 }
 0x434   :  { %3472 = vmatpush3.bf16.msra.mxu0 %v3895_v58 }
 0x435   :  { %3479 = vmatprep.subr.bf16.mxu0 %v3646_v35  ;;  %3478 = vmatpush3.bf16.msra.mxu1 %v3833_v40 }
 0x436   :  { %3485 = vmatprep.subr.bf16.mxu1 %v3646_v35  ;;  %v2467_v61 = vld [vmem:[#allocation5 + $0x6] sm:$0x3] }
 0x437   :  { %3223 = vmatmul.mubr.msk.f32.vlgmr.msra.gmra.mrb[16].mxu0 %vm506_vm2, %v1480_v54 }
 0x438   :  { %3481 = vmatpush3.bf16.msra.mxu0 %v3857_v48  ;;  %3244 = vmatprep.mubr.msk.f32.mxu0 %vm3647_vm1, %v3648_v41 }
 0x439   :  { %3482 = vmatprep.subr.bf16.mxu0 %v3646_v35 }
 0x43c   :  { %3484 = vmatpush3.bf16.msra.mxu0 %v3869_v52 }
 0x43d   :  { %3491 = vmatprep.subr.bf16.mxu0 %v3646_v35 }
 0x502   :  { %v1554_v56 = vpop.f32.mrb[14].mxu0  ;;  %v1624_v59 = vpop.f32.mrb[16].mxu1 }
 0x503   :  { %v1630_v60 = vadd.f32 %v1629_v57, %v1554_v56  ;;  %v3202_v62 = vpop.f32.mrb[15].mxu0  ;;  %v3213_v0 = vpop.f32.mrb[17].mxu1  ;;  %v1639_v4 = vadd.f32 %v1638_v3, %v1624_v59  ;;  %v2466_v3 = vld [vmem:[#allocation5 + $0x4] sm:$0x3] }
 0x505   :  { %v2826_v2 = vmul.f32 -1.442695, %v1630_v60  ;;  %v2827_v5 = vmul.f32 -1.442695, %v1639_v4 }
 0x507   :  { %3578 = vpow2.f32 %v2826_v2 }
 0x508   :  { %3580 = vpow2.f32 %v2827_v5 }
 0x50a   :  { %v1714_v1 = vpop.f32.mrb[16].mxu0 }
 0x50b   :  { %v3224_v6 = vpop.f32.mrb[17].mxu0  ;;  %v1715_v12 = vadd.f32 %v3970_v8, %v1714_v1  ;;  %v2477_v1 = vld [vmem:[#allocation6 + $0xa] sm:$0x3] }
 0x511   :  { %v3579_v7 = vpop.eup %3578 }
 0x512   :  { %v1634_v9 = vadd.f32 1.0, %v3579_v7  ;;  %v3581_v10 = vpop.eup %3580 }
 0x513   :  { %v1643_v11 = vadd.f32 1.0, %v3581_v10 }
 0x514   :  { %3582 = vrcp.f32 %v1634_v9 }
 0x515   :  { %3584 = vrcp.f32 %v1643_v11 }
 0x51e   :  { %v3583_v13 = vpop.eup %3582 }
 0x51f   :  { %v1718_v14 = vmul.f32 %v3583_v13, %v1715_v12  ;;  %v3585_v17 = vpop.eup %3584 }
 0x520   :  { %v1721_v18 = vsub.f32 1.0, %v3585_v17  ;;  %v1723_v20 = vmul.f32 %v3585_v17, %v1480_v54  ;;  %v1891_v54 = vld [vmem:[#allocation4 + $0xa] sm:$0x3]  ;;  %v2126_v17 = vld [vmem:[#allocation3 + $0xc] sm:$0x3] }
 0x521   :  { %v1719_v16 = vadd.f32 %v1718_v14, %v1647_v15 }
 0x523   :  { %3586 = vtanh.f32 %v1719_v16 }
 0x52d   :  { %v3587_v19 = vpop.eup %3586 }
 0x52e   :  { %v1722_v47 = vmul.f32 %v3587_v19, %v1721_v18 }
 0x530   :  { %v1724_v21 = vadd.f32 %v1723_v20, %v1722_v47 }
 0x532   :  { %1726 = vst.msk [vmem:[#allocation5 + $0x8] sm:$0x3] %vm199_vm3, %v1724_v21  ;;  %1728 = vst.msk [vmem:[#allocation6 + $0x6] sm:$0x3] %vm199_vm3, %v1724_v21  ;;  %3234 = vmatmul.mubr.msk.f32.vlgmr.msra.gmra.mrb[18].mxu1 %vm506_vm2, %v1724_v21  ;;  %3245 = vmatmul.mubr.msk.f32.vlgmr.msra.gmra.mrb[18].mxu0 %vm506_vm2, %v1724_v21 }
 0x533   :  { %3487 = vmatpush3.bf16.msra.mxu1 %v3880_v55  ;;  %3255 = vmatprep.mubr.msk.f32.mxu1 %vm3647_vm1, %v3648_v41 }
 0x534   :  { %3488 = vmatprep.subr.bf16.mxu1 %v3646_v35  ;;  %3493 = vmatpush3.bf16.msra.mxu0 %v3815_v33 }
 0x535   :  { %3494 = vmatprep.subr.bf16.mxu0 %v3646_v35  ;;  %3266 = vmatprep.mubr.msk.f32.mxu0 %vm3647_vm1, %v3648_v41 }
 0x537   :  { %3490 = vmatpush3.bf16.msra.mxu1 %v3895_v58 }
 0x538   :  { %3497 = vmatprep.subr.bf16.mxu1 %v3646_v35  ;;  %3496 = vmatpush3.bf16.msra.mxu0 %v3833_v40 }
 0x539   :  { %v2475_v24 = vld [vmem:[#allocation6 + $0x6] sm:$0x3]  ;;  %3503 = vmatprep.subr.bf16.mxu0 %v3646_v35 }
 0x53a   :  { %3256 = vmatmul.mubr.msk.f32.vlgmr.msra.gmra.mrb[20].mxu1 %vm506_vm2, %v1724_v21  ;;  %v4098_v25 = vsel %vm2463_vm4, %v2467_v61, %v2475_v24 }
 0x53b   :  { %v2498_v26 = vmul.f32 %v4090_v23, %v4098_v25  ;;  %3499 = vmatpush3.bf16.msra.mxu1 %v3857_v48  ;;  %3277 = vmatprep.mubr.msk.f32.mxu1 %vm3647_vm1, %v3648_v41 }
 0x53c   :  { %3500 = vmatprep.subr.bf16.mxu1 %v3646_v35 }
 0x53d   :  { %v2512_v27 = vsel %vm199_vm3, %v2498_v26, 0.0 }
 0x53e   :  { %2513 = vadd.xlane.f32.xlu1 %v2512_v27 }
 0x53f   :  { %3502 = vmatpush3.bf16.msra.mxu1 %v3869_v52 }
 0x540   :  { %3509 = vmatprep.subr.bf16.mxu1 %v3646_v35 }
 0x605   :  { %v1798_v28 = vpop.f32.mrb[18].mxu1  ;;  %v1868_v30 = vpop.f32.mrb[18].mxu0 }
 0x606   :  { %v1874_v31 = vadd.f32 %v1873_v29, %v1798_v28  ;;  %v3235_v32 = vpop.f32.mrb[19].mxu1  ;;  %v3246_v34 = vpop.f32.mrb[19].mxu0  ;;  %v1883_v38 = vadd.f32 %v1882_v37, %v1868_v30  ;;  %v2135_v29 = vld [vmem:[#allocation4 + $0xc] sm:$0x3] }
 0x608   :  { %v2831_v36 = vmul.f32 -1.442695, %v1874_v31  ;;  %v2832_v39 = vmul.f32 -1.442695, %v1883_v38 }
 0x60a   :  { %3588 = vpow2.f32 %v2831_v36 }
 0x60b   :  { %3590 = vpow2.f32 %v2832_v39  ;;  %v2465_v39 = vld [vmem:[#allocation5 + $0x2] sm:$0x3] }
 0x60d   :  { %v1958_v42 = vpop.f32.mrb[20].mxu1 }
 0x60e   :  { %v3257_v43 = vpop.f32.mrb[21].mxu1  ;;  %v1959_v50 = vadd.f32 %v3970_v8, %v1958_v42 }
 0x614   :  { %v3589_v44 = vpop.eup %3588 }
 0x615   :  { %v1878_v45 = vadd.f32 1.0, %v3589_v44  ;;  %v3591_v46 = vpop.eup %3590 }
 0x616   :  { %v1887_v49 = vadd.f32 1.0, %v3591_v46  ;;  %v2361_v46 = vld [vmem:[#allocation2 + $0xe] sm:$0x3] }
 0x617   :  { %3592 = vrcp.f32 %v1878_v45 }
 0x618   :  { %3594 = vrcp.f32 %v1887_v49 }
 0x621   :  { %v3593_v51 = vpop.eup %3592 }
 0x622   :  { %v1962_v53 = vmul.f32 %v3593_v51, %v1959_v50  ;;  %v3595_v57 = vpop.eup %3594 }
 0x623   :  { %v1965_v59 = vsub.f32 1.0, %v3595_v57  ;;  %v1967_v62 = vmul.f32 %v3595_v57, %v1724_v21 }
 0x624   :  { %v1963_v56 = vadd.f32 %v1962_v53, %v1891_v54  ;;  %v2370_v53 = vld [vmem:[#allocation3 + $0xe] sm:$0x3] }
 0x626   :  { %3596 = vtanh.f32 %v1963_v56 }
 0x630   :  { %v3597_v60 = vpop.eup %3596 }
 0x631   :  { %v1966_v0 = vmul.f32 %v3597_v60, %v1965_v59 }
 0x633   :  { %v1968_v2 = vadd.f32 %v1967_v62, %v1966_v0 }
 0x635   :  { %1970 = vst.msk [vmem:[#allocation5 + $0xa] sm:$0x3] %vm199_vm3, %v1968_v2  ;;  %1972 = vst.msk [vmem:[#allocation6 + $0x4] sm:$0x3] %vm199_vm3, %v1968_v2  ;;  %3267 = vmatmul.mubr.msk.f32.vlgmr.msra.gmra.mrb[20].mxu0 %vm506_vm2, %v1968_v2  ;;  %3278 = vmatmul.mubr.msk.f32.vlgmr.msra.gmra.mrb[22].mxu1 %vm506_vm2, %v1968_v2 }
 0x636   :  { %3505 = vmatpush3.bf16.msra.mxu0 %v3880_v55  ;;  %3288 = vmatprep.mubr.msk.f32.mxu0 %vm3647_vm1, %v3648_v41 }
 0x637   :  { %3506 = vmatprep.subr.bf16.mxu0 %v3646_v35  ;;  %3511 = vmatpush3.bf16.msra.mxu1 %v3815_v33 }
 0x638   :  { %3512 = vmatprep.subr.bf16.mxu1 %v3646_v35  ;;  %3299 = vmatprep.mubr.msk.f32.mxu1 %vm3647_vm1, %v3648_v41 }
 0x63a   :  { %3508 = vmatpush3.bf16.msra.mxu0 %v3895_v58 }
 0x63b   :  { %3515 = vmatprep.subr.bf16.mxu0 %v3646_v35  ;;  %3514 = vmatpush3.bf16.msra.mxu1 %v3833_v40 }
 0x63c   :  { %v2474_v4 = vld [vmem:[#allocation6 + $0x4] sm:$0x3]  ;;  %v2469_v5 = vld [vmem:[#allocation5 + $0xa] sm:$0x3]  ;;  %3521 = vmatprep.subr.bf16.mxu1 %v3646_v35 }
 0x63d   :  { %3289 = vmatmul.mubr.msk.f32.vlgmr.msra.gmra.mrb[22].mxu0 %vm506_vm2, %v1968_v2  ;;  %v4129_v33 = vsel %vm2463_vm4, %v2466_v3, %v2474_v4  ;;  %v4133_v6 = vsel %vm2463_vm4, %v2469_v5, %v2477_v1  ;;  %v2379_v1 = vld [vmem:[#allocation4 + $0xe] sm:$0x3] }
 0x63e   :  { %v2497_v7 = vmul.f32 %v4090_v23, %v4129_v33  ;;  %3517 = vmatpush3.bf16.msra.mxu0 %v3857_v48  ;;  %3310 = vmatprep.mubr.msk.f32.mxu0 %vm3647_vm1, %v3648_v41  ;;  %v2500_v9 = vmul.f32 %v4090_v23, %v4133_v6  ;;  %v2117_v48 = vld [vmem:[#allocation2 + $0xc] sm:$0x3] }
 0x63f   :  { %3518 = vmatprep.subr.bf16.mxu0 %v3646_v35 }
 0x640   :  { %v2509_v40 = vsel %vm199_vm3, %v2497_v7, 0.0  ;;  %v2518_v10 = vsel %vm199_vm3, %v2500_v9, 0.0 }
 0x641   :  { %2510 = vadd.xlane.f32.xlu1 %v2509_v40 }
 0x642   :  { %3520 = vmatpush3.bf16.msra.mxu0 %v3869_v52 }
 0x643   :  { %3527 = vmatprep.subr.bf16.mxu0 %v3646_v35 }
 0x645   :  { %2519 = vadd.xlane.f32.xlu1 %v2518_v10 }
 0x708   :  { %v2042_v11 = vpop.f32.mrb[20].mxu0  ;;  %v2112_v12 = vpop.f32.mrb[22].mxu1 }
 0x709   :  { %v2118_v13 = vadd.f32 %v2117_v48, %v2042_v11  ;;  %v3268_v14 = vpop.f32.mrb[21].mxu0  ;;  %v3279_v15 = vpop.f32.mrb[23].mxu1  ;;  %v2127_v18 = vadd.f32 %v2126_v17, %v2112_v12  ;;  %v2476_v17 = vld [vmem:[#allocation6 + $0x8] sm:$0x3] }
 0x70a   :  { %v2479_v14 = vld [vmem:[#allocation6 + $0xe] sm:$0x3] }
 0x70b   :  { %v2836_v16 = vmul.f32 -1.442695, %v2118_v13  ;;  %v2837_v19 = vmul.f32 -1.442695, %v2127_v18  ;;  %v2464_v13 = vld [vmem:[#allocation5] sm:$0x3] }
 0x70d   :  { %3598 = vpow2.f32 %v2836_v16 }
 0x70e   :  { %3600 = vpow2.f32 %v2837_v19 }
 0x710   :  { %v2202_v20 = vpop.f32.mrb[22].mxu0 }
 0x711   :  { %v3290_v47 = vpop.f32.mrb[23].mxu0  ;;  %v2203_v26 = vadd.f32 %v3970_v8, %v2202_v20 }
 0x717   :  { %v3599_v52 = vpop.eup %3598 }
 0x718   :  { %v2122_v21 = vadd.f32 1.0, %v3599_v52  ;;  %v3601_v61 = vpop.eup %3600 }
 0x719   :  { %v2131_v24 = vadd.f32 1.0, %v3601_v61 }
 0x71a   :  { %3602 = vrcp.f32 %v2122_v21 }
 0x71b   :  { %3604 = vrcp.f32 %v2131_v24 }
 0x724   :  { %v3603_v27 = vpop.eup %3602 }
 0x725   :  { %v2206_v28 = vmul.f32 %v3603_v27, %v2203_v26  ;;  %v3605_v31 = vpop.eup %3604  ;;  %v2478_v27 = vld [vmem:[#allocation6 + $0xc] sm:$0x3] }
 0x726   :  { %v2209_v32 = vsub.f32 1.0, %v3605_v31  ;;  %v2211_v36 = vmul.f32 %v3605_v31, %v1968_v2 }
 0x727   :  { %v2207_v30 = vadd.f32 %v2206_v28, %v2135_v29 }
 0x729   :  { %3606 = vtanh.f32 %v2207_v30 }
 0x733   :  { %v3607_v34 = vpop.eup %3606 }
 0x734   :  { %v2210_v37 = vmul.f32 %v3607_v34, %v2209_v32  ;;  %v2514_v32 = vpop.xlane.xlu1 %2513 }
 0x736   :  { %v2212_v38 = vadd.f32 %v2211_v36, %v2210_v37  ;;  %v2545_v37 = vsub.s32 %v4078_v22, %v3917_v63  ;;  %v2845_v22 = vld [vmem:[%s4269_s2] ss:$0 sm:$0xff] }
 0x737   :  { %vm2534_vm12 = vcmp.lt.s32.totalorder %v3917_v63, %v2845_v22 }
 0x738   :  { %2214 = vst.msk [vmem:[#allocation5 + $0xc] sm:$0x3] %vm199_vm3, %v2212_v38  ;;  %2216 = vst.msk [vmem:[#allocation6 + $0x2] sm:$0x3] %vm199_vm3, %v2212_v38  ;;  %3300 = vmatmul.mubr.msk.f32.vlgmr.msra.gmra.mrb[24].mxu1 %vm506_vm2, %v2212_v38  ;;  %3311 = vmatmul.mubr.msk.f32.vlgmr.msra.gmra.mrb[24].mxu0 %vm506_vm2, %v2212_v38  ;;  %v2511_v36 = vpop.xlane.xlu1 %2510 }
 0x739   :  { %3523 = vmatpush3.bf16.msra.mxu1 %v3880_v55  ;;  %3321 = vmatprep.mubr.msk.f32.mxu1 %vm3647_vm1, %v3648_v41 }
 0x73a   :  { %3524 = vmatprep.subr.bf16.mxu1 %v3646_v35  ;;  %3332 = vmatprep.mubr.msk.f32.mxu0 %vm3647_vm1, %v3648_v41 }
 0x73d   :  { %3526 = vmatpush3.bf16.msra.mxu1 %v3895_v58 }
 0x73f   :  { %v2473_v42 = vld [vmem:[#allocation6 + $0x2] sm:$0x3]  ;;  %v2470_v21 = vld [vmem:[#allocation5 + $0xc] sm:$0x3] }
 0x740   :  { %3322 = vmatmul.mubr.msk.f32.vlgmr.msra.gmra.mrb[26].mxu1 %vm506_vm2, %v2212_v38  ;;  %v4162_v43 = vsel %vm2463_vm4, %v2465_v39, %v2473_v42  ;;  %v4196_v28 = vsel %vm2463_vm4, %v2470_v21, %v2478_v27  ;;  %v2628_v27 = vsub.s32 2, %v3917_v63 }
 0x741   :  { %v2496_v55 = vmul.f32 %v4090_v23, %v4162_v43  ;;  %v2501_v30 = vmul.f32 %v4090_v23, %v4196_v28 }
 0x743   :  { %v2506_v44 = vsel %vm199_vm3, %v2496_v55, 0.0  ;;  %v2521_v31 = vsel %vm199_vm3, %v2501_v30, 0.0  ;;  %v2554_v55 = vrot.slane %v2511_v36, %v2545_v37  ;;  %v2635_v30 = vsub.s32 3, %v3917_v63 }
 0x744   :  { %2507 = vadd.xlane.f32.xlu0 %v2506_v44  ;;  %v2558_v44 = vrot.slane %v2514_v32, %v2545_v37  ;;  %v2692_v32 = vld [vmem:[%s4281_s14 + $0x8] sm:$0xff] }
 0x7d1   :  { %v2508_v34 = vpop.xlane.xlu0 %2507 }
 0x7d2   :  { %v2550_v39 = vrot.slane %v2508_v34, %v2545_v37 }
 0x80b   :  { %v2286_v45 = vpop.f32.mrb[24].mxu1  ;;  %v2356_v49 = vpop.f32.mrb[24].mxu0 }
 0x80c   :  { %v2362_v41 = vadd.f32 %v2361_v46, %v2286_v45  ;;  %v3301_v50 = vpop.f32.mrb[25].mxu1  ;;  %v3312_v58 = vpop.f32.mrb[25].mxu0  ;;  %v2371_v54 = vadd.f32 %v2370_v53, %v2356_v49 }
 0x80d   :  { %v2520_v45 = vpop.xlane.xlu1 %2519 }
 0x80e   :  { %v2841_v51 = vmul.f32 -1.442695, %v2362_v41  ;;  %v2842_v56 = vmul.f32 -1.442695, %v2371_v54  ;;  %v2566_v53 = vrot.slane %v2520_v45, %v2545_v37  ;;  %v2649_v45 = vsub.s32 5, %v3917_v63 }
 0x810   :  { %3608 = vpow2.f32 %v2841_v51 }
 0x811   :  { %3610 = vpow2.f32 %v2842_v56 }
 0x813   :  { %v2446_v57 = vpop.f32.mrb[26].mxu1 }
 0x814   :  { %v3323_v59 = vpop.f32.mrb[27].mxu1  ;;  %v2447_v3 = vadd.f32 %v3970_v8, %v2446_v57  ;;  %v2468_v8 = vld [vmem:[#allocation5 + $0x8] sm:$0x3] }
 0x815   :  { %v4184_v20 = vsel %vm2463_vm4, %v2468_v8, %v2476_v17 }
 0x816   :  { %v2499_v26 = vmul.f32 %v4090_v23, %v4184_v20 }
 0x818   :  { %v2515_v29 = vsel %vm199_vm3, %v2499_v26, 0.0 }
 0x81a   :  { %v3609_v60 = vpop.eup %3608 }
 0x81b   :  { %v2366_v62 = vadd.f32 1.0, %v3609_v60  ;;  %v3611_v0 = vpop.eup %3610 }
 0x81c   :  { %v2375_v2 = vadd.f32 1.0, %v3611_v0 }
 0x81d   :  { %3612 = vrcp.f32 %v2366_v62 }
 0x81e   :  { %3614 = vrcp.f32 %v2375_v2 }
 0x827   :  { %v3613_v4 = vpop.eup %3612 }
 0x828   :  { %v2450_v5 = vmul.f32 %v3613_v4, %v2447_v3  ;;  %v3615_v40 = vpop.eup %3614 }
 0x829   :  { %v2453_v9 = vsub.f32 1.0, %v3615_v40  ;;  %v2455_v11 = vmul.f32 %v3615_v40, %v2212_v38 }
 0x82a   :  { %v2451_v7 = vadd.f32 %v2450_v5, %v2379_v1 }
 0x82c   :  { %3616 = vtanh.f32 %v2451_v7 }
 0x836   :  { %v3617_v10 = vpop.eup %3616 }
 0x837   :  { %v2454_v48 = vmul.f32 %v3617_v10, %v2453_v9 }
 0x839   :  { %v2456_v12 = vadd.f32 %v2455_v11, %v2454_v48 }
 0x83b   :  { %2458 = vst.msk [vmem:[#allocation5 + $0xe] sm:$0x3] %vm199_vm3, %v2456_v12  ;;  %2459 = vst.msk [vmem:[#allocation6] sm:$0x3] %vm199_vm3, %v2456_v12 }
 0x83c   :  { %2460 = vst.msk [vmem:[%s4284_s17] sm:$0x3] %vm199_vm3, %v2456_v12 }
 0x842   :  { %v2472_v15 = vld [vmem:[#allocation6] sm:$0x3]  ;;  %v2471_v16 = vld [vmem:[#allocation5 + $0xe] sm:$0x3] }
 0x843   :  { %v4176_v18 = vsel %vm2463_vm4, %v2464_v13, %v2472_v15  ;;  %v4180_v19 = vsel %vm2463_vm4, %v2471_v16, %v2479_v14 }
 0x844   :  { %v2495_v47 = vmul.f32 %v4090_v23, %v4176_v18  ;;  %v2502_v52 = vmul.f32 %v4090_v23, %v4180_v19 }
 0x846   :  { %v2503_v61 = vsel %vm199_vm3, %v2495_v47, 0.0  ;;  %v2524_v24 = vsel %vm199_vm3, %v2502_v52, 0.0  ;;  %v2621_v47 = vsub.s32 1, %v3917_v63  ;;  %v2614_v52 = vsub.s32 0, %v3917_v63 }
 0x847   :  { %2504 = vadd.xlane.f32.xlu0 %v2503_v61  ;;  %2525 = vadd.xlane.f32.xlu1 %v2524_v24 }
 0x84b   :  { %2516 = vadd.xlane.f32.xlu0 %v2515_v29  ;;  %v2642_v29 = vsub.s32 4, %v3917_v63 }
 0x84f   :  { %2522 = vadd.xlane.f32.xlu0 %v2521_v31  ;;  %v2691_v31 = vld [vmem:[%s4281_s14] sm:$0xff] }
 0x8d4   :  { %v2505_v38 = vpop.xlane.xlu0 %2504  ;;  %v2526_v58 = vpop.xlane.xlu1 %2525 }
 0x8d5   :  { %v2546_v42 = vrot.slane %v2505_v38, %v2545_v37  ;;  %v2574_v57 = vrot.slane %v2526_v58, %v2545_v37  ;;  %v3528_v38 = vpack.c.bf16 %v2692_v32, %v2691_v31 }
 0x8d7   :  { %v2576_v23 = vsel %vm2575_vm5, %v2550_v39, %v2546_v42  ;;  %3529 = vmatpush3.bf16.msra.mxu0 %v3528_v38  ;;  %v2693_v39 = vld [vmem:[%s4281_s14 + $0x10] sm:$0xff]  ;;  %v2694_v42 = vld [vmem:[%s4281_s14 + $0x18] sm:$0xff] }
 0x8d8   :  { %v2578_v46 = vsel %vm2577_vm6, %v2554_v55, %v2576_v23  ;;  %v2517_v49 = vpop.xlane.xlu0 %2516  ;;  %3530 = vmatprep.subr.bf16.mxu0 %v3646_v35  ;;  %v3531_v23 = vpack.c.bf16 %v2694_v42, %v2693_v39 }
 0x8d9   :  { %v2562_v41 = vrot.slane %v2517_v49, %v2545_v37  ;;  %v2580_v50 = vsel %vm2579_vm7, %v2558_v44, %v2578_v46  ;;  %v2663_v49 = vsub.s32 7, %v3917_v63 }
 0x8db   :  { %v2582_v51 = vsel %vm2581_vm8, %v2562_v41, %v2580_v50  ;;  %3532 = vmatpush3.bf16.msra.mxu0 %v3531_v23 }
 0x8dc   :  { %v2523_v54 = vpop.xlane.xlu0 %2522  ;;  %v2584_v59 = vsel %vm2583_vm9, %v2566_v53, %v2582_v51 }
 0x8dd   :  { %v2570_v56 = vrot.slane %v2523_v54, %v2545_v37  ;;  %v2656_v37 = vsub.s32 6, %v3917_v63 }
 0x8df   :  { %v2586_v60 = vsel %vm2585_vm10, %v2570_v56, %v2584_v59 }
 0x8e0   :  { %v2588_v62 = vsel %vm2587_vm11, %v2574_v57, %v2586_v60 }
 0x8e1   :  { %v2590_v0 = vsel %vm2534_vm12, %v2588_v62, -1e+30 }
 0x8e2   :  { %v2592_v2 = vsel %vm2591_vm13, %v2590_v0, -inf }
 0x8e3   :  { %v2593_v3 = vrot.slane %v2592_v2, 4 }
 0x8e5   :  { %v2594_v4 = vmax.f32 %v2592_v2, %v2593_v3 }
 0x8e7   :  { %v2595_v5 = vrot.slane %v2594_v4, 2 }
 0x8e9   :  { %v2596_v1 = vmax.f32 %v2594_v4, %v2595_v5 }
 0x8eb   :  { %v2597_v7 = vrot.slane %v2596_v1, 1 }
 0x8ed   :  { %v2598_v40 = vmax.f32 %v2596_v1, %v2597_v7 }
 0x8ef   :  { %v2599_v9 = vsub.f32 %v2590_v0, %v2598_v40 }
 0x8f1   :  { %v2600_v10 = vmul.f32 1.442695, %v2599_v9 }
 0x8f3   :  { %3618 = vpow2.f32 %v2600_v10 }
 0x8fd   :  { %v3619_v11 = vpop.eup %3618 }
 0x8fe   :  { %v2602_v48 = vsel %vm2534_vm12, %v3619_v11, 0.0 }
 0x8ff   :  { %v2603_v12 = vsel %vm2591_vm13, %v2602_v48, 0.0 }
 0x900   :  { %v2604_v8 = vrot.slane %v2603_v12, 4 }
 0x902   :  { %v2605_v13 = vadd.f32 %v2604_v8, %v2603_v12 }
 0x904   :  { %v2606_v14 = vrot.slane %v2605_v13, 2 }
 0x906   :  { %v2607_v15 = vadd.f32 %v2606_v14, %v2605_v13 }
 0x908   :  { %v2608_v16 = vrot.slane %v2607_v15, 1 }
 0x90a   :  { %v2609_v17 = vadd.f32 %v2608_v16, %v2607_v15 }
 0x90c   :  { %3620 = vrcp.f32 %v2609_v17 }
 0x916   :  { %v3621_v21 = vpop.eup %3620 }
 0x917   :  { %v2611_v61 = vmul.f32 %v3621_v21, %v2602_v48 }
 0x919   :  { %v2622_v24 = vrot.slane %v2611_v61, %v2621_v47  ;;  %v2615_v26 = vrot.slane %v2611_v61, %v2614_v52  ;;  %v2629_v34 = vrot.slane %v2611_v61, %v2628_v27  ;;  %v2643_v36 = vrot.slane %v2611_v61, %v2642_v29 }
 0x91a   :  { %v2636_v55 = vrot.slane %v2611_v61, %v2635_v30  ;;  %v2657_v44 = vrot.slane %v2611_v61, %v2656_v37  ;;  %v2650_v46 = vrot.slane %v2611_v61, %v2649_v45  ;;  %v2664_v41 = vrot.slane %v2611_v61, %v2663_v49 }
 0x91b   :  { %2624 = vbcast.lane.b32.xlu1 %v2622_v24, 256  ;;  %2617 = vbcast.lane.b32.xlu0 %v2615_v26, 256 }
 0x91f   :  { %2631 = vbcast.lane.b32.xlu1 %v2629_v34, 256  ;;  %2645 = vbcast.lane.b32.xlu0 %v2643_v36, 256 }
 0x923   :  { %2638 = vbcast.lane.b32.xlu1 %v2636_v55, 256  ;;  %2659 = vbcast.lane.b32.xlu0 %v2657_v44, 256 }
 0x927   :  { %2652 = vbcast.lane.b32.xlu1 %v2650_v46, 256 }
 0x92b   :  { %2666 = vbcast.lane.b32.xlu1 %v2664_v41, 256 }
 0x98d   :  { %v2625_v50 = vpop.permute.xlu1 %2624  ;;  %v2618_v58 = vpop.permute.xlu0 %2617 }
 0x98e   :  { %v2669_v51 = vmul.f32 %v2625_v50, %v4162_v43  ;;  %v2668_v22 = vmul.f32 %v2618_v58, %v4176_v18 }
 0x990   :  { %v2677_v35 = vsel %vm199_vm3, %v2669_v51, 0.0  ;;  %v2676_v56 = vsel %vm199_vm3, %v2668_v22, 0.0 }
 0x991   :  { %v2632_v53 = vpop.permute.xlu1 %2631  ;;  %v2646_v54 = vpop.permute.xlu0 %2645  ;;  %v2678_v63 = vadd.f32 %v2677_v35, %v2676_v56 }
 0x992   :  { %v2670_v57 = vmul.f32 %v2632_v53, %v4129_v33  ;;  %v2672_v62 = vmul.f32 %v2646_v54, %v4184_v20 }
 0x994   :  { %v2679_v59 = vsel %vm199_vm3, %v2670_v57, 0.0  ;;  %v2683_v5 = vsel %vm199_vm3, %v2672_v62, 0.0 }
 0x995   :  { %v2639_v60 = vpop.permute.xlu1 %2638  ;;  %v2680_v2 = vadd.f32 %v2679_v59, %v2678_v63  ;;  %v2660_v43 = vpop.permute.xlu0 %2659 }
 0x996   :  { %v2671_v0 = vmul.f32 %v2639_v60, %v4098_v25  ;;  %v2674_v1 = vmul.f32 %v2660_v43, %v4196_v28  ;;  %v2846_v28 = vld [vmem:[%s4282_s15] ss:$0 sm:$0xff] }
 0x998   :  { %v2681_v18 = vsel %vm199_vm3, %v2671_v0, 0.0  ;;  %v2687_v20 = vsel %vm199_vm3, %v2674_v1, 0.0 }
 0x999   :  { %v2682_v3 = vadd.f32 %v2681_v18, %v2680_v2  ;;  %v2653_v4 = vpop.permute.xlu1 %2652 }
 0x99a   :  { %v2673_v33 = vmul.f32 %v2653_v4, %v4133_v6 }
 0x99b   :  { %v2684_v7 = vadd.f32 %v2683_v5, %v2682_v3 }
 0x99c   :  { %v2685_v40 = vsel %vm199_vm3, %v2673_v33, 0.0 }
 0x99d   :  { %v2686_v9 = vadd.f32 %v2685_v40, %v2684_v7  ;;  %v2667_v10 = vpop.permute.xlu1 %2666 }
 0x99e   :  { %v2675_v25 = vmul.f32 %v2667_v10, %v4180_v19 }
 0x99f   :  { %v2688_v11 = vadd.f32 %v2687_v20, %v2686_v9 }
 0x9a0   :  { %v2689_v48 = vsel %vm199_vm3, %v2675_v25, 0.0 }
 0x9a1   :  { %v2690_v12 = vadd.f32 %v2689_v48, %v2688_v11 }
 0x9a3   :  { %3333 = vmatmul.mubr.msk.f32.vlgmr.msra.gmra.mrb[26].mxu0 %vm506_vm2, %v2690_v12 }
 0xa76   :  { %v2771_v6 = vpop.f32.mrb[26].mxu0 }
 0xa77   :  { %v2772_v8 = vadd.f32 %v2846_v28, %v2771_v6  ;;  %v3334_v13 = vpop.f32.mrb[27].mxu0 }
 0xa79   :  { %2775 = vst [vmem:[#allocation7] sm:$0x3] %v2772_v8 }
 0xa7a   :  { %3633 = shalt.err (!%p3630_p4)
}
 0xa7b   :  { %s3634_s11 = scalar_lea.hbm %s4283_s16, 32 }
 0xa7c   :  { %p3635_p5 = scmp.ne.s32.totalorder %s4283_s16, %s3634_s11  ;;  %p3638_p6 = scmp.lt.u32.totalorder %s3634_s11, %s4283_s16 }
 0xa7e   :  { %p3640_p7 = pnand %p3638_p6, %p3635_p5 }
 0xa80   :  { %3643 = shalt.err (!%p3640_p7)
}
 0xa81   :  { %2785 = dma.vmem_to_hbm [thread:$0]  %s2783_s10, 32, %s4283_s16, [#allocation8]  }
 0xa82   :  { %3644 = dma.done.wait [#allocation8], 32  }
 0xa83   :  { %3645 = vsyncadd [#allocation8], 4294967264 }
 0xa84   :  { %2793 = vsyncpa [#allocation8], 1 }

</bundles_post_ra>
